<compile_context>
chip_gen: v5e
topology: v5e:2x2
jax: 0.10.0
libtpu: 0.0.40
codegen_flags: <defaults>
</compile_context>

<pallas_src>
import functools

import jax
import jax.numpy as jnp
from jax.experimental import pallas as pl
from jax.experimental.pallas import tpu as pltpu


def _round_up(x, m):
    return ((x + m - 1) // m) * m


def attention_kernel(h_ref, enc_ref, wht_ref, webd_ref, bt_ref, vbd_ref,
                     out_ref, *, exact_div):
    # h_ref:    (TN, H_dim)                  hidden rows            (compute dtype)
    # enc_ref:  (TN, src_len*s_dim)          lane-folded encoder    (compute dtype)
    # wht_ref:  (H_dim, src_len*ms)          Wh tiled src_len times (compute dtype)
    # webd_ref: (src_len*s_dim, src_len*ms)  block-diag(We)         (compute dtype)
    # bt_ref:   (1, src_len*ms)              bias tiled             (f32)
    # vbd_ref:  (src_len*ms, src_len)        block-diag(v)          (f32)
    # out_ref:  (TN, src_len)                softmax over src_len   (f32)

    # cat((hidden, enc), -1) @ W.T + b  ==  enc@We + hidden@Wh + b, with all
    # src_len positions folded into the lane axis.  Stays 2-D throughout.
    z = jnp.dot(enc_ref[...], webd_ref[...], preferred_element_type=jnp.float32)
    z = z + jnp.dot(h_ref[...], wht_ref[...], preferred_element_type=jnp.float32)
    energy = jnp.tanh(z + bt_ref[...])                 # (TN, src_len*ms), f32

    # model_size -> 1 projection per src position on the (idle) MXU, f32.
    s = jnp.dot(energy, vbd_ref[...], preferred_element_type=jnp.float32)

    # Softmax over src_len (lane axis), f32 throughout.
    s = s - jnp.max(s, axis=-1, keepdims=True)
    p = jnp.exp(s)
    denom = jnp.sum(p, axis=-1, keepdims=True)
    if exact_div:
        p = p / denom                                  # exact f32 path
    else:
        p = p * pl.reciprocal(denom, approx=True)      # EUP slot, ~free
    out_ref[...] = p.astype(out_ref.dtype)


def _choose_tile_rows(N, block_rows):
    """Rows per grid step: multiple of 8, big enough to amortize the
    ~0.35us/step overhead (v5e/v6e), but capped at ~N/2 so the grid has at
    least 2 steps whenever N > 8 (both v7x TensorCores busy, balanced)."""
    cap_half = max(8, _round_up(N, 16) // 2)
    return max(8, min(_round_up(block_rows, 8), cap_half))


def _estimate_vmem_bytes(TN, h_cols, enc_cols, z_cols, out_cols, in_itemsize):
    """Conservative per-step VMEM footprint (lane-padded, double-buffered)."""
    lane = lambda c: _round_up(c, 128)
    est = 2 * TN * (lane(h_cols) + lane(enc_cols)) * in_itemsize   # input bufs
    est += 2 * TN * lane(out_cols) * 4                             # output bufs
    est += 3 * TN * lane(z_cols) * 4                               # f32 temps
    est += 2 * (lane(h_cols) + lane(enc_cols)) * lane(z_cols) * in_itemsize
    est += 2 * lane(z_cols) * (128 + lane(out_cols)) * 4           # bias + v
    return est


def attention_forward(hidden, encoder_outputs, W, b, v, *,
                      block_rows=512,
                      compute_dtype=jnp.bfloat16):
    """hidden: [B, D1, H_dim]; encoder_outputs: [B, D1, src_len, s_dim];
    W: [model_size, H_dim + s_dim] (hidden features first, matching the cat
    order in the PyTorch module); b: [model_size]; v: [model_size].
    Returns softmax attention weights [B, D1, src_len] float32."""
    B, D1, H_dim = hidden.shape
    _, _, src_len, s_dim = encoder_outputs.shape
    model_size = W.shape[0]
    assert W.shape[1] == H_dim + s_dim
    N = B * D1
    LS = src_len * s_dim          # folded lane width of the encoder stream
    LM = src_len * model_size     # folded lane width of the energy

    TN = _choose_tile_rows(N, block_rows)
    N_pad = _round_up(N, TN)
    grid_n = N_pad // TN

    h2d = hidden.reshape(N, H_dim)
    e2d = encoder_outputs.reshape(N, LS)   # row n = [enc[n,0,:], enc[n,1,:], ...]
    if N_pad != N:
        # Padded rows produce tanh(b) -> a *uniform* softmax row (not zeros);
        # they are sliced off below (out[:N]) and must never be consumed.
        h2d = jnp.pad(h2d, ((0, N_pad - N), (0, 0)))
        e2d = jnp.pad(e2d, ((0, N_pad - N), (0, 0)))

    # bf16 on the big streams by default (HBM-bound); bias / scoring stay f32.
    h2d = h2d.astype(compute_dtype)
    e2d = e2d.astype(compute_dtype)

    Wh = W[:, :H_dim].T            # acts on hidden   (cat order: hidden first)
    We = W[:, H_dim:].T            # acts on encoder
    eye = jnp.eye(src_len, dtype=W.dtype)
    We_bd = jnp.kron(eye, We).astype(compute_dtype)           # (LS, LM)
    Wh_t = jnp.tile(Wh, (1, src_len)).astype(compute_dtype)   # (H_dim, LM)
    b_t = jnp.tile(b, src_len).reshape(1, LM).astype(jnp.float32)
    V_bd = jnp.kron(eye, v.reshape(model_size, 1)).astype(jnp.float32)  # (LM, src_len)

    vmem_limit = int(min(
        64 * 1024 * 1024,
        max(16 * 1024 * 1024,
            2 * _estimate_vmem_bytes(TN, H_dim, LS, LM, src_len,
                                     jnp.dtype(compute_dtype).itemsize))))

    kernel = functools.partial(
        attention_kernel,
        exact_div=(jnp.dtype(compute_dtype) == jnp.dtype(jnp.float32)))

    out = pl.pallas_call(
        kernel,
        out_shape=jax.ShapeDtypeStruct((N_pad, src_len), jnp.float32),
        grid_spec=pltpu.PrefetchScalarGridSpec(
            num_scalar_prefetch=0,
            grid=(grid_n,),
            in_specs=[
                pl.BlockSpec((TN, H_dim), lambda i: (i, 0)),
                pl.BlockSpec((TN, LS), lambda i: (i, 0)),
                pl.BlockSpec((H_dim, LM), lambda i: (0, 0)),
                pl.BlockSpec((LS, LM), lambda i: (0, 0)),
                pl.BlockSpec((1, LM), lambda i: (0, 0)),
                pl.BlockSpec((LM, src_len), lambda i: (0, 0)),
            ],
            out_specs=pl.BlockSpec((TN, src_len), lambda i: (i, 0)),
        ),
        compiler_params=pltpu.CompilerParams(
            dimension_semantics=("parallel",),
            vmem_limit_bytes=vmem_limit),
    )(h2d, e2d, Wh_t, We_bd, b_t, V_bd)

    return out[:N].reshape(B, D1, src_len)


def attention_ref(hidden, encoder_outputs, W, b, v):
    """Pure-JAX f32 reference mirroring the PyTorch forward exactly."""
    src_len = encoder_outputs.shape[2]
    h = jnp.repeat(hidden[:, :, None, :], src_len, axis=2)
    x = jnp.concatenate([h, encoder_outputs], axis=-1)
    energy = jnp.tanh(x @ W.T + b)
    attention = energy @ v
    return jax.nn.softmax(attention, axis=-1)


if __name__ == "__main__":
    B, D1, src_len = 2, 128, 8
    s_dim, H_dim, model_size = 16, 16, 32

    key = jax.random.PRNGKey(0)
    k1, k2, k3, k4, k5 = jax.random.split(key, 5)

    hidden = jax.random.normal(k1, (B, D1, H_dim), jnp.float32)
    encoder_outputs = jax.random.normal(k2, (B, D1, src_len, s_dim), jnp.float32)

    # Synthetic nn.Linear(s_dim+H_dim, model_size) and nn.Linear(model_size, 1,
    # bias=False): first H_dim in-features act on `hidden`, remaining s_dim on
    # `encoder_outputs` (matching the cat order in the module).
    W = 0.1 * jax.random.normal(k3, (model_size, H_dim + s_dim), jnp.float32)
    b = 0.1 * jax.random.normal(k4, (model_size,), jnp.float32)
    v = 0.1 * jax.random.normal(k5, (model_size,), jnp.float32)

    ref = attention_ref(hidden, encoder_outputs, W, b, v)

    # Exact-precision path (f32 streams, exact divide): tight tolerance.
    out_f32 = jax.block_until_ready(
        attention_forward(hidden, encoder_outputs, W, b, v,
                          compute_dtype=jnp.float32))
    assert out_f32.shape == (B, D1, src_len), out_f32.shape
    assert jnp.allclose(out_f32, ref, atol=1e-4, rtol=1e-4), \
        float(jnp.max(jnp.abs(out_f32 - ref)))

    # Default bf16 streaming path (bandwidth optimized): looser tolerance.
    out_bf16 = jax.block_until_ready(
        attention_forward(hidden, encoder_outputs, W, b, v))
    assert out_bf16.shape == (B, D1, src_len), out_bf16.shape
    assert jnp.allclose(out_bf16, ref, atol=2e-2, rtol=2e-2), \
        float(jnp.max(jnp.abs(out_bf16 - ref)))

    print("KERNEL_OK")
</pallas_src>

<mosaic_0001>
module attributes {stable_mosaic.version = 11 : i64} {
  func.func @attention_kernel(%arg0: i32, %arg1: memref<128x16xf32, #tpu.memory_space<vmem>>, %arg2: memref<128x128xf32, #tpu.memory_space<vmem>>, %arg3: memref<16x256xf32, #tpu.memory_space<vmem>>, %arg4: memref<128x256xf32, #tpu.memory_space<vmem>>, %arg5: memref<1x256xf32, #tpu.memory_space<vmem>>, %arg6: memref<256x8xf32, #tpu.memory_space<vmem>>, %arg7: memref<128x8xf32, #tpu.memory_space<vmem>>) attributes {dimension_semantics = [#tpu.dimension_semantics<parallel>], iteration_bounds = array<i64: 2>, scalar_prefetch = 0 : i64, scratch_operands = 0 : i64, tpu.core_type = #tpu.core_type<tc>, window_params = [{transform_indices = @transform_0, window_bounds = array<i64: 128, 16>}, {transform_indices = @transform_1, window_bounds = array<i64: 128, 128>}, {pipeline_mode = #tpu.pipeline_mode<synchronous>, transform_indices = @transform_2, window_bounds = array<i64: 16, 256>}, {pipeline_mode = #tpu.pipeline_mode<synchronous>, transform_indices = @transform_3, window_bounds = array<i64: 128, 256>}, {pipeline_mode = #tpu.pipeline_mode<synchronous>, transform_indices = @transform_4, window_bounds = array<i64: 1, 256>}, {pipeline_mode = #tpu.pipeline_mode<synchronous>, transform_indices = @transform_5, window_bounds = array<i64: 256, 8>}, {transform_indices = @transform_6, window_bounds = array<i64: 128, 8>}]} {
    %c0 = arith.constant 0 : index
    %c0_0 = arith.constant 0 : index
    %0 = vector.load %arg2[%c0, %c0_0] : memref<128x128xf32, #tpu.memory_space<vmem>>, vector<128x128xf32>
    %c0_1 = arith.constant 0 : index
    %c0_2 = arith.constant 0 : index
    %1 = vector.load %arg4[%c0_1, %c0_2] : memref<128x256xf32, #tpu.memory_space<vmem>>, vector<128x256xf32>
    %cst = arith.constant dense<0.000000e+00> : vector<128x256xf32>
    %2 = tpu.matmul %0, %1, %cst {dimension_numbers = #tpu.dot_dimension_numbers<[1], [0], [0], [1], [0, 0, 1, 1], [], []>} : vector<128x128xf32>, vector<128x256xf32>, vector<128x256xf32> -> vector<128x256xf32>
    %c0_3 = arith.constant 0 : index
    %c0_4 = arith.constant 0 : index
    %3 = vector.load %arg1[%c0_3, %c0_4] : memref<128x16xf32, #tpu.memory_space<vmem>>, vector<128x16xf32>
    %c0_5 = arith.constant 0 : index
    %c0_6 = arith.constant 0 : index
    %4 = vector.load %arg3[%c0_5, %c0_6] : memref<16x256xf32, #tpu.memory_space<vmem>>, vector<16x256xf32>
    %cst_7 = arith.constant dense<0.000000e+00> : vector<128x256xf32>
    %5 = tpu.matmul %3, %4, %cst_7 {dimension_numbers = #tpu.dot_dimension_numbers<[1], [0], [0], [1], [0, 0, 1, 1], [], []>} : vector<128x16xf32>, vector<16x256xf32>, vector<128x256xf32> -> vector<128x256xf32>
    %6 = arith.addf %2, %5 : vector<128x256xf32>
    %c0_8 = arith.constant 0 : index
    %c0_9 = arith.constant 0 : index
    %7 = vector.load %arg5[%c0_8, %c0_9] : memref<1x256xf32, #tpu.memory_space<vmem>>, vector<1x256xf32>
    %8 = vector.broadcast %7 : vector<1x256xf32> to vector<128x256xf32>
    %9 = arith.addf %6, %8 : vector<128x256xf32>
    %10 = math.tanh %9 : vector<128x256xf32>
    %c0_10 = arith.constant 0 : index
    %c0_11 = arith.constant 0 : index
    %11 = vector.load %arg6[%c0_10, %c0_11] : memref<256x8xf32, #tpu.memory_space<vmem>>, vector<256x8xf32>
    %cst_12 = arith.constant dense<0.000000e+00> : vector<128x8xf32>
    %12 = tpu.matmul %10, %11, %cst_12 {dimension_numbers = #tpu.dot_dimension_numbers<[1], [0], [0], [1], [0, 0, 1, 1], [], []>} : vector<128x256xf32>, vector<256x8xf32>, vector<128x8xf32> -> vector<128x8xf32>
    %cst_13 = arith.constant dense<0xFF800000> : vector<128xf32>
    %13 = vector.multi_reduction <maximumf>, %12, %cst_13 [1] : vector<128x8xf32> to vector<128xf32>
    %14 = vector.shape_cast %13 : vector<128xf32> to vector<128x1xf32>
    %15 = vector.broadcast %14 : vector<128x1xf32> to vector<128x8xf32>
    %16 = arith.subf %12, %15 : vector<128x8xf32>
    %17 = math.exp %16 : vector<128x8xf32>
    %cst_14 = arith.constant dense<0.000000e+00> : vector<128xf32>
    %18 = vector.multi_reduction <add>, %17, %cst_14 [1] : vector<128x8xf32> to vector<128xf32>
    %19 = vector.shape_cast %18 : vector<128xf32> to vector<128x1xf32>
    %20 = vector.broadcast %19 : vector<128x1xf32> to vector<128x8xf32>
    %21 = arith.divf %17, %20 : vector<128x8xf32>
    %c0_15 = arith.constant 0 : index
    %c0_16 = arith.constant 0 : index
    %22 = vector.load %arg7[%c0_15, %c0_16] : memref<128x8xf32, #tpu.memory_space<vmem>>, vector<128x8xf32>
    tpu.vector_store %arg7[%c0_15, %c0_16], %21 {strides = array<i32>} : memref<128x8xf32, #tpu.memory_space<vmem>>, vector<128x8xf32>,
    return
  }
  func.func @transform_0(%arg0: i32) -> (i32, i32) {
    %c0_i32 = arith.constant 0 : i32
    %c0_i32_0 = arith.constant 0 : i32
    return %arg0, %c0_i32 : i32, i32
  }
  func.func @transform_1(%arg0: i32) -> (i32, i32) {
    %c0_i32 = arith.constant 0 : i32
    %c0_i32_0 = arith.constant 0 : i32
    return %arg0, %c0_i32 : i32, i32
  }
  func.func @transform_2(%arg0: i32) -> (i32, i32) {
    %c0_i32 = arith.constant 0 : i32
    %c0_i32_0 = arith.constant 0 : i32
    %c0_i32_1 = arith.constant 0 : i32
    return %c0_i32, %c0_i32_0 : i32, i32
  }
  func.func @transform_3(%arg0: i32) -> (i32, i32) {
    %c0_i32 = arith.constant 0 : i32
    %c0_i32_0 = arith.constant 0 : i32
    %c0_i32_1 = arith.constant 0 : i32
    return %c0_i32, %c0_i32_0 : i32, i32
  }
  func.func @transform_4(%arg0: i32) -> (i32, i32) {
    %c0_i32 = arith.constant 0 : i32
    %c0_i32_0 = arith.constant 0 : i32
    %c0_i32_1 = arith.constant 0 : i32
    return %c0_i32, %c0_i32_0 : i32, i32
  }
  func.func @transform_5(%arg0: i32) -> (i32, i32) {
    %c0_i32 = arith.constant 0 : i32
    %c0_i32_0 = arith.constant 0 : i32
    %c0_i32_1 = arith.constant 0 : i32
    return %c0_i32, %c0_i32_0 : i32, i32
  }
  func.func @transform_6(%arg0: i32) -> (i32, i32) {
    %c0_i32 = arith.constant 0 : i32
    %c0_i32_0 = arith.constant 0 : i32
    return %arg0, %c0_i32 : i32, i32
  }
}

</mosaic_0001>

<bundles_post_ra>
// kernel: tpu_custom_call.1
= control target key start
LH: loop header
LB: loop body
LE: loop exit
PB: predicated region body
PF: predicated region fallthrough
CT: control target
= control target key end

     0   :  { %11 = vsyncpa [#allocation3], 0  ;;  %s1674_s21 = smov 0   ;;  %s2253_s0 = inlined_call_operand.vmem [shape: f32[256,16], index: 0, kind: input, shape index: {}]   ;;  %s2254_s1 = inlined_call_operand.vmem [shape: f32[256,128], index: 1, kind: input, shape index: {}]   ;;  %s2255_s2 = inlined_call_operand.vmem [shape: f32[16,256], index: 2, kind: input, shape index: {}]   ;;  %s2256_s3 = inlined_call_operand.vmem [shape: f32[128,256], index: 3, kind: input, shape index: {}]   ;;  %s2257_s4 = inlined_call_operand.hbm [shape: f32[1,256], index: 4, kind: input, shape index: {}]   ;;  %s2258_s5 = inlined_call_operand.vmem [shape: f32[256,8], index: 5, kind: input, shape index: {}]   ;;  %s2259_s6 = inlined_call_operand.vmem [shape: f32[256,8], index: 6, kind: output, shape index: {}]  }
   0x1 LB: > { %s1382_s22 = sadd.s32 4294967295, %s1636_s21   ;;  %p1384_p0 = scmp.ge.s32.totalorder %s1636_s21, 1  ;;  %s1636_s21 = sphi %s1674_s21, %s17_s21  }
   0x2   : > { %p184_p1 = scmp.lt.s32.totalorder %s1636_s21, 3  ;;  %s202_s25 = sshll.u32 %s2257_s4, 4  ;;  %s203_s25 = int_to_ptr.hbm [resolvable:$true] %s202_s25 }
   0x3   : > { %p1457_p3 = scmp.eq.s32.totalorder %s1382_s22, 0  ;;  %s1638_s26 = smov [#allocation2]  }
   0x4   : > { %p185_p2 = pnand %p1384_p0, %p184_p1  ;;  %s204_s27 = sshll.u32 %s1638_s26, 4  ;;  %s205_s27 = int_to_ptr.vmem [resolvable:$true] %s204_s27 }
   0x6   : > { %p1453_p4 = pneg %p185_p2  ;;  %238 = sbr.rel (%p185_p2) target bundleno = 740 (0x2e4), region = 44 }
   0x8   : > { %p1454_p5 = pnand %p1457_p3, %p1453_p4 }
   0xa   : > { %1456 = dma.hbm_to_vmem [thread:$0]  (!%p1454_p5), %s203_s25, 32, %s205_s27, [#allocation3]  }
   0xb   : > { %1631 = dma.done.wait (%p1457_p3), [#allocation3], 32  }
   0xc   : > { %1633 = vsyncadd (%p1457_p3), [#allocation3], 4294967264  ;;  %s1389_s28 = sshll.u32 %s1382_s22, 4  ;;  %v358_v0 = vld [vmem:[%s2255_s2 + $0x10] sm:$0xff]  ;;  %v359_v1 = vld [vmem:[%s2255_s2 + $0x18] sm:$0xff]  ;;  %vm360_vm0 = vcmask 130048  }
   0xd   : > { %p275_p6 = scmp.lt.s32.totalorder %s1389_s28, 31  ;;  %v356_v2 = vld [vmem:[%s2255_s2] sm:$0xff]  ;;  %1429 = vmatpush.msra.mxu2 %v358_v0  ;;  %1431 = vmatpush.msra.mxu3 %v359_v1  ;;  %v357_v3 = vld [vmem:[%s2255_s2 + $0x8] sm:$0xff]  ;;  %v339_v6 = vld [vmem:[%s2256_s3 + $0xf8] sm:$0xff]  ;;  %vm901_vm1 = vcmask 64512  }
   0xe   : > { %v338_v7 = vld [vmem:[%s2256_s3 + $0xf0] sm:$0xff]  ;;  %423 = vmatpush.msra.mxu0 %v358_v0  ;;  %488 = vmatpush.msra.mxu1 %v359_v1  ;;  %v337_v8 = vld [vmem:[%s2256_s3 + $0xe8] sm:$0xff]  ;;  %v336_v9 = vld [vmem:[%s2256_s3 + $0xe0] sm:$0xff] }
   0xf   : > { %s2261_s28 = smov (!%p275_p6, %s1389_s28), 31  ;;  %1430 = vmatpush.msra.mxu2 %v356_v2  ;;  %1432 = vmatpush.msra.mxu3 %v357_v3  ;;  %v335_v10 = vld [vmem:[%s2256_s3 + $0xd8] sm:$0xff]  ;;  %v334_v11 = vld [vmem:[%s2256_s3 + $0xd0] sm:$0xff]  ;;  %v333_v12 = vld [vmem:[%s2256_s3 + $0xc8] sm:$0xff] }
  0x10   : > { %s1685_s29 = sshll.u32 %s2261_s28, 3  ;;  %424 = vmatpush.msra.mxu0 %v356_v2  ;;  %489 = vmatpush.msra.mxu1 %v357_v3  ;;  %v332_v13 = vld [vmem:[%s2256_s3 + $0xc0] sm:$0xff]  ;;  %v330_v15 = vld [vmem:[%s2256_s3 + $0xb0] sm:$0xff]  ;;  %v331_v16 = vld [vmem:[%s2256_s3 + $0xb8] sm:$0xff] }
  0x11   : > { %s1691_s8 = scalar_lea.vmem %s2253_s0, %s1685_s29  ;;  %604 = vmatpush.msrb.mxu3 %v339_v6  ;;  %539 = vmatpush.msrb.mxu2 %v338_v7  ;;  %v328_v17 = vld [vmem:[%s2256_s3 + $0xa0] sm:$0xff]  ;;  %v329_v18 = vld [vmem:[%s2256_s3 + $0xa8] sm:$0xff]  ;;  %v326_v19 = vld [vmem:[%s2256_s3 + $0x90] sm:$0xff]  ;;  %s1840_s20 = scalar_lea.vmem %s2254_s1, %s1685_s29 }
  0x12   : > { %v349_v4 = vld [vmem:[%s1691_s8 + $0x48] sm:$0xff]  ;;  %v1707_v5 = vld [vmem:[%s1691_s8 + $0x40] sm:$0xff]  ;;  %v350_v14 = vld [vmem:[%s1691_s8 + $0x50] sm:$0xff]  ;;  %s2200_s23 = scalar_lea.vmem %s2259_s6, %s1685_s29 }
  0x13   : > { %1404 = vmatmul.msk.f32.vlgmr.msra.gmra.mxu2 %vm360_vm0, %v349_v4  ;;  %1419 = vmatmul.msk.f32.vlgmr.msra.gmra.mxu3 %vm360_vm0, %v1707_v5  ;;  %v327_v20 = vld [vmem:[%s2256_s3 + $0x98] sm:$0xff]  ;;  %v324_v21 = vld [vmem:[%s2256_s3 + $0x80] sm:$0xff]  ;;  %v325_v22 = vld [vmem:[%s2256_s3 + $0x88] sm:$0xff] }
  0x14   : > { %605 = vmatpush.msrb.mxu3 %v337_v8  ;;  %540 = vmatpush.msrb.mxu2 %v336_v9  ;;  %v351_v23 = vld [vmem:[%s1691_s8 + $0x58] sm:$0xff]  ;;  %v322_v24 = vld [vmem:[%s2256_s3 + $0x70] sm:$0xff]  ;;  %v320_v26 = vld [vmem:[%s2256_s3 + $0x60] sm:$0xff] }
  0x15   : > { %v323_v25 = vld [vmem:[%s2256_s3 + $0x78] sm:$0xff]  ;;  %v321_v27 = vld [vmem:[%s2256_s3 + $0x68] sm:$0xff]  ;;  %v318_v28 = vld [vmem:[%s2256_s3 + $0x50] sm:$0xff] }
  0x16   : > { %606 = vmatpush.msrb.mxu3 %v335_v10  ;;  %541 = vmatpush.msrb.mxu2 %v334_v11  ;;  %v319_v29 = vld [vmem:[%s2256_s3 + $0x58] sm:$0xff]  ;;  %v316_v30 = vld [vmem:[%s2256_s3 + $0x40] sm:$0xff]  ;;  %v317_v31 = vld [vmem:[%s2256_s3 + $0x48] sm:$0xff] }
  0x17   : > { %v352_v32 = vld [vmem:[%s1691_s8 + $0x60] sm:$0xff]  ;;  %v314_v33 = vld [vmem:[%s2256_s3 + $0x30] sm:$0xff]  ;;  %v315_v34 = vld [vmem:[%s2256_s3 + $0x38] sm:$0xff] }
  0x18   : > { %607 = vmatpush.msrb.mxu3 %v333_v12  ;;  %542 = vmatpush.msrb.mxu2 %v332_v13  ;;  %v312_v35 = vld [vmem:[%s2256_s3 + $0x20] sm:$0xff]  ;;  %v313_v36 = vld [vmem:[%s2256_s3 + $0x28] sm:$0xff]  ;;  %v310_v38 = vld [vmem:[%s2256_s3 + $0x10] sm:$0xff] }
  0x19   : > { %v340_v37 = vld [vmem:[%s1691_s8] sm:$0xff]  ;;  %v311_v39 = vld [vmem:[%s2256_s3 + $0x18] sm:$0xff]  ;;  %v309_v41 = vld [vmem:[%s2256_s3 + $0x8] sm:$0xff] }
  0x1a   : > { %543 = vmatpush.msrb.mxu2 %v330_v15  ;;  %608 = vmatpush.msrb.mxu3 %v331_v16  ;;  %v308_v40 = vld [vmem:[%s2256_s3] sm:$0xff]  ;;  %v353_v42 = vld [vmem:[%s1691_s8 + $0x68] sm:$0xff]  ;;  %v354_v44 = vld [vmem:[%s1691_s8 + $0x70] sm:$0xff] }
  0x1b   : > { %1405 = vmatmul.msk.f32.gmra.mxu2 %vm360_vm0, %v350_v14  ;;  %1420 = vmatmul.msk.f32.gmra.mxu3 %vm360_vm0, %v349_v4  ;;  %v341_v43 = vld [vmem:[%s1691_s8 + $0x8] sm:$0xff]  ;;  %v342_v45 = vld [vmem:[%s1691_s8 + $0x10] sm:$0xff]  ;;  %v355_v46 = vld [vmem:[%s1691_s8 + $0x78] sm:$0xff] }
  0x1c   : > { %544 = vmatpush.msrb.mxu2 %v328_v17  ;;  %609 = vmatpush.msrb.mxu3 %v329_v18  ;;  %v343_v47 = vld [vmem:[%s1691_s8 + $0x18] sm:$0xff]  ;;  %v292_v48 = vld [vmem:[%s1840_s20] sm:$0xff]  ;;  %v293_v50 = vld [vmem:[%s1840_s20 + $0x8] sm:$0xff] }
  0x1d   : > { %1395 = vmatmul.msk.f32.vlgmr.msra.gmra.mxu0 %vm360_vm0, %v340_v37  ;;  %1411 = vmatmul.msk.f32.vlgmr.msra.gmra.mxu1 %vm360_vm0, %v340_v37  ;;  %v344_v49 = vld [vmem:[%s1691_s8 + $0x20] sm:$0xff]  ;;  %v345_v51 = vld [vmem:[%s1691_s8 + $0x28] sm:$0xff]  ;;  %v294_v52 = vld [vmem:[%s1840_s20 + $0x10] sm:$0xff] }
  0x1e   : > { %545 = vmatpush.msrb.mxu2 %v326_v19  ;;  %610 = vmatpush.msrb.mxu3 %v327_v20  ;;  %v346_v53 = vld [vmem:[%s1691_s8 + $0x30] sm:$0xff]  ;;  %v295_v54 = vld [vmem:[%s1840_s20 + $0x18] sm:$0xff]  ;;  %v296_v56 = vld [vmem:[%s1840_s20 + $0x20] sm:$0xff] }
  0x1f   : > { %v347_v55 = vld [vmem:[%s1691_s8 + $0x38] sm:$0xff]  ;;  %v297_v57 = vld [vmem:[%s1840_s20 + $0x28] sm:$0xff]  ;;  %v298_v58 = vld [vmem:[%s1840_s20 + $0x30] sm:$0xff] }
  0x20   : > { %546 = vmatpush.msrb.mxu2 %v324_v21  ;;  %611 = vmatpush.msrb.mxu3 %v325_v22  ;;  %v754_v59 = vld [vmem:[%s2258_s5 + $0x78] sm:$0xff]  ;;  %v769_v62 = vld [vmem:[%s2258_s5 + $0xf0] sm:$0xff]  ;;  %v768_v0 = vld [vmem:[%s2258_s5 + $0xe8] sm:$0xff] }
  0x21   : > { %v770_v60 = vld [vmem:[%s2258_s5 + $0xf8] sm:$0xff]  ;;  %771 = vmatpush.msrb.mxu0 %v754_v59  ;;  %v753_v63 = vld [vmem:[%s2258_s5 + $0x70] sm:$0xff]  ;;  %v300_v1 = vld [vmem:[%s1840_s20 + $0x40] sm:$0xff] }
  0x22   : > { %547 = vmatpush.msrb.mxu2 %v322_v24  ;;  %612 = vmatpush.msrb.mxu3 %v323_v25  ;;  %v299_v61 = vld [vmem:[%s1840_s20 + $0x38] sm:$0xff]  ;;  %v752_v2 = vld [vmem:[%s2258_s5 + $0x68] sm:$0xff]  ;;  %v767_v3 = vld [vmem:[%s2258_s5 + $0xe0] sm:$0xff] }
  0x23   : > { %1406 = vmatmul.msk.f32.gmra.mxu2 %vm360_vm0, %v351_v23  ;;  %1421 = vmatmul.msk.f32.gmra.mxu3 %vm360_vm0, %v350_v14  ;;  %v751_v4 = vld [vmem:[%s2258_s5 + $0x60] sm:$0xff]  ;;  %v301_v6 = vld [vmem:[%s1840_s20 + $0x48] sm:$0xff]  ;;  %v750_v7 = vld [vmem:[%s2258_s5 + $0x58] sm:$0xff] }
  0x24   : > { %548 = vmatpush.msrb.mxu2 %v320_v26  ;;  %613 = vmatpush.msrb.mxu3 %v321_v27  ;;  %v765_v10 = vld [vmem:[%s2258_s5 + $0xd0] sm:$0xff]  ;;  %v764_v12 = vld [vmem:[%s2258_s5 + $0xc8] sm:$0xff]  ;;  %v763_v17 = vld [vmem:[%s2258_s5 + $0xc0] sm:$0xff] }
  0x25   : > { %1396 = vmatmul.msk.f32.gmra.mxu0 %vm360_vm0, %v341_v43  ;;  %1412 = vmatmul.msk.f32.gmra.mxu1 %vm360_vm0, %v341_v43  ;;  %v749_v11 = vld [vmem:[%s2258_s5 + $0x50] sm:$0xff]  ;;  %v748_v14 = vld [vmem:[%s2258_s5 + $0x48] sm:$0xff]  ;;  %v747_v18 = vld [vmem:[%s2258_s5 + $0x40] sm:$0xff] }
  0x26   : > { %549 = vmatpush.msrb.mxu2 %v318_v28  ;;  %614 = vmatpush.msrb.mxu3 %v319_v29  ;;  %v302_v13 = vld [vmem:[%s1840_s20 + $0x50] sm:$0xff]  ;;  %v762_v19 = vld [vmem:[%s2258_s5 + $0xb8] sm:$0xff]  ;;  %v760_v25 = vld [vmem:[%s2258_s5 + $0xa8] sm:$0xff] }
  0x27   : > { %836 = vmatpush.msrb.mxu1 %v770_v60  ;;  %772 = vmatpush.msrb.mxu0 %v753_v63  ;;  %v303_v20 = vld [vmem:[%s1840_s20 + $0x58] sm:$0xff]  ;;  %v761_v24 = vld [vmem:[%s2258_s5 + $0xb0] sm:$0xff]  ;;  %v304_v26 = vld [vmem:[%s1840_s20 + $0x60] sm:$0xff] }
  0x28   : > { %550 = vmatpush.msrb.mxu2 %v316_v30  ;;  %615 = vmatpush.msrb.mxu3 %v317_v31  ;;  %v745_v27 = vld [vmem:[%s2258_s5 + $0x30] sm:$0xff]  ;;  %v744_v30 = vld [vmem:[%s2258_s5 + $0x28] sm:$0xff] }
  0x29   : > { %837 = vmatpush.msrb.mxu1 %v769_v62  ;;  %773 = vmatpush.msrb.mxu0 %v752_v2  ;;  %v305_v31 = vld [vmem:[%s1840_s20 + $0x68] sm:$0xff]  ;;  %v757_v43 = vld [vmem:[%s2258_s5 + $0x90] sm:$0xff] }
  0x2a   : > { %551 = vmatpush.msrb.mxu2 %v314_v33  ;;  %616 = vmatpush.msrb.mxu3 %v315_v34  ;;  %v742_v33 = vld [vmem:[%s2258_s5 + $0x18] sm:$0xff]  ;;  %v759_v34 = vld [vmem:[%s2258_s5 + $0xa0] sm:$0xff] }
  0x2b   : > { %1407 = vmatmul.msk.f32.gmra.mxu2 %vm360_vm0, %v352_v32  ;;  %1422 = vmatmul.msk.f32.gmra.mxu3 %vm360_vm0, %v351_v23  ;;  %v746_v23 = vld [vmem:[%s2258_s5 + $0x38] sm:$0xff] }
  0x2c   : > { %552 = vmatpush.msrb.mxu2 %v312_v35  ;;  %617 = vmatpush.msrb.mxu3 %v313_v36  ;;  %v758_v35 = vld [vmem:[%s2258_s5 + $0x98] sm:$0xff]  ;;  %v741_v36 = vld [vmem:[%s2258_s5 + $0x10] sm:$0xff] }
  0x2d   : > { %1397 = vmatmul.msk.f32.gmra.mxu0 %vm360_vm0, %v342_v45  ;;  %1413 = vmatmul.msk.f32.gmra.mxu1 %vm360_vm0, %v342_v45 }
  0x2e   : > { %553 = vmatpush.msrb.mxu2 %v310_v38  ;;  %618 = vmatpush.msrb.mxu3 %v311_v39  ;;  %v740_v39 = vld [vmem:[%s2258_s5 + $0x8] sm:$0xff] }
  0x2f   : > { %838 = vmatpush.msrb.mxu1 %v768_v0  ;;  %774 = vmatpush.msrb.mxu0 %v751_v4 }
  0x30   : > { %554 = vmatpush.msrb.mxu2 %v308_v40  ;;  %619 = vmatpush.msrb.mxu3 %v309_v41  ;;  %v306_v40 = vld [vmem:[%s1840_s20 + $0x70] sm:$0xff]  ;;  %v739_v41 = vld [vmem:[%s2258_s5] sm:$0xff] }
  0x31   : > { %839 = vmatpush.msrb.mxu1 %v767_v3  ;;  %775 = vmatpush.msrb.mxu0 %v750_v7 }
  0x32   : > { %1433 = vmatpush.msra.mxu2 %v754_v59 }
  0x33   : > { %1408 = vmatmul.msk.f32.gmra.mxu2 %vm360_vm0, %v353_v42  ;;  %1423 = vmatmul.msk.f32.gmra.mxu3 %vm360_vm0, %v352_v32  ;;  %v743_v32 = vld [vmem:[%s2258_s5 + $0x20] sm:$0xff] }
  0x34   : > { %1434 = vmatpush.msra.mxu2 %v753_v63  ;;  %776 = vmatpush.msrb.mxu0 %v749_v11 }
  0x35   : > { %1398 = vmatmul.msk.f32.gmra.mxu0 %vm360_vm0, %v343_v47  ;;  %1414 = vmatmul.msk.f32.gmra.mxu1 %vm360_vm0, %v343_v47  ;;  %v307_v47 = vld [vmem:[%s1840_s20 + $0x78] sm:$0xff] }
  0x36   : > { %1435 = vmatpush.msra.mxu2 %v752_v2  ;;  %777 = vmatpush.msrb.mxu0 %v748_v14 }
  0x38   : > { %1436 = vmatpush.msra.mxu2 %v751_v4  ;;  %778 = vmatpush.msrb.mxu0 %v747_v18 }
  0x3a   : > { %1437 = vmatpush.msra.mxu2 %v750_v7  ;;  %779 = vmatpush.msrb.mxu0 %v746_v23 }
  0x3b   : > { %1409 = vmatmul.msk.f32.gmra.mxu2 %vm360_vm0, %v354_v44  ;;  %1424 = vmatmul.msk.f32.gmra.mxu3 %vm360_vm0, %v353_v42 }
  0x3c   : > { %1438 = vmatpush.msra.mxu2 %v749_v11  ;;  %780 = vmatpush.msrb.mxu0 %v745_v27 }
  0x3d   : > { %1399 = vmatmul.msk.f32.gmra.mxu0 %vm360_vm0, %v344_v49  ;;  %1415 = vmatmul.msk.f32.gmra.mxu1 %vm360_vm0, %v344_v49 }
  0x3e   : > { %1439 = vmatpush.msra.mxu2 %v748_v14  ;;  %781 = vmatpush.msrb.mxu0 %v744_v30 }
  0x40   : > { %1440 = vmatpush.msra.mxu2 %v747_v18  ;;  %782 = vmatpush.msrb.mxu0 %v743_v32 }
  0x42   : > { %1441 = vmatpush.msra.mxu2 %v746_v23  ;;  %783 = vmatpush.msrb.mxu0 %v742_v33 }
  0x43   : > { %1410 = vmatmul.msk.f32.gmra.mxu2 %vm360_vm0, %v355_v46  ;;  %1425 = vmatmul.msk.f32.gmra.mxu3 %vm360_vm0, %v354_v44  ;;  %v756_v44 = vld [vmem:[%s2258_s5 + $0x88] sm:$0xff] }
  0x44   : > { %1442 = vmatpush.msra.mxu2 %v745_v27  ;;  %784 = vmatpush.msrb.mxu0 %v741_v36 }
  0x45   : > { %1400 = vmatmul.msk.f32.gmra.mxu0 %vm360_vm0, %v345_v51  ;;  %1416 = vmatmul.msk.f32.gmra.mxu1 %vm360_vm0, %v345_v51 }
  0x46   : > { %1443 = vmatpush.msra.mxu2 %v744_v30  ;;  %785 = vmatpush.msrb.mxu0 %v740_v39 }
  0x48   : > { %1444 = vmatpush.msra.mxu2 %v743_v32  ;;  %786 = vmatpush.msrb.mxu0 %v739_v41 }
  0x4a   : > { %1445 = vmatpush.msra.mxu2 %v742_v33 }
  0x4b   : > { %1426 = vmatmul.msk.f32.gmra.mxu3 %vm360_vm0, %v355_v46  ;;  %555 = vmatmul.f32.vlgmr.msrb.gmra.mxu2 %v292_v48 }
  0x4c   : > { %1446 = vmatpush.msra.mxu2 %v741_v36 }
  0x4d   : > { %1401 = vmatmul.msk.f32.gmra.mxu0 %vm360_vm0, %v346_v53  ;;  %1417 = vmatmul.msk.f32.gmra.mxu1 %vm360_vm0, %v346_v53  ;;  %v669_v53 = vld [vmem:[#allocation2] sm:$0x3] }
  0x4e   : > { %1447 = vmatpush.msra.mxu2 %v740_v39 }
  0x50   : > { %1448 = vmatpush.msra.mxu2 %v739_v41 }
  0x53   : > { %558 = vmatmul.f32.gmra.mxu2 %v293_v50  ;;  %620 = vmatmul.f32.vlgmr.msrb.gmra.mxu3 %v292_v48  ;;  %v755_v48 = vld [vmem:[%s2258_s5 + $0x80] sm:$0xff] }
  0x55   : > { %1402 = vmatmul.msk.f32.gmra.mxu0 %vm360_vm0, %v347_v55  ;;  %1418 = vmatmul.msk.f32.gmra.mxu1 %vm360_vm0, %v347_v55 }
  0x5b   : > { %561 = vmatmul.f32.gmra.mxu2 %v294_v52  ;;  %623 = vmatmul.f32.gmra.mxu3 %v293_v50 }
  0x5d   : > { %1403 = vmatmul.msk.f32.gmra.mxu0 %vm360_vm0, %v1707_v5  ;;  %v766_v5 = vld [vmem:[%s2258_s5 + $0xd8] sm:$0xff] }
  0x5e   : > { %840 = vmatpush.msrb.mxu1 %v766_v5 }
  0x60   : > { %841 = vmatpush.msrb.mxu1 %v765_v10 }
  0x62   : > { %842 = vmatpush.msrb.mxu1 %v764_v12 }
  0x63   : > { %564 = vmatmul.f32.gmra.mxu2 %v295_v54  ;;  %626 = vmatmul.f32.gmra.mxu3 %v294_v52 }
  0x64   : > { %843 = vmatpush.msrb.mxu1 %v763_v17 }
  0x66   : > { %844 = vmatpush.msrb.mxu1 %v762_v19 }
  0x68   : > { %845 = vmatpush.msrb.mxu1 %v761_v24 }
  0x6a   : > { %846 = vmatpush.msrb.mxu1 %v760_v25 }
  0x6b   : > { %567 = vmatmul.f32.gmra.mxu2 %v296_v56  ;;  %629 = vmatmul.f32.gmra.mxu3 %v295_v54  ;;  %v1999_v54 = vperm.slane %v669_v53, 0 }
  0x6c   : > { %847 = vmatpush.msrb.mxu1 %v759_v34 }
  0x6e   : > { %848 = vmatpush.msrb.mxu1 %v758_v35 }
  0x70   : > { %849 = vmatpush.msrb.mxu1 %v757_v43 }
  0x72   : > { %850 = vmatpush.msrb.mxu1 %v756_v44 }
  0x73   : > { %570 = vmatmul.f32.gmra.mxu2 %v297_v57  ;;  %632 = vmatmul.f32.gmra.mxu3 %v296_v56 }
  0x74   : > { %851 = vmatpush.msrb.mxu1 %v755_v48 }
  0x7b   : > { %573 = vmatmul.f32.gmra.mxu2 %v298_v58  ;;  %635 = vmatmul.f32.gmra.mxu3 %v297_v57 }
  0x83   : > { %576 = vmatmul.f32.gmra.mxu2 %v299_v61  ;;  %638 = vmatmul.f32.gmra.mxu3 %v298_v58 }
  0x8b   : > { %579 = vmatmul.f32.gmra.mxu2 %v300_v1  ;;  %641 = vmatmul.f32.gmra.mxu3 %v299_v61  ;;  %v2004_v61 = vperm.slane %v669_v53, 1 }
  0x93   : > { %582 = vmatmul.f32.gmra.mxu2 %v301_v6  ;;  %644 = vmatmul.f32.gmra.mxu3 %v300_v1 }
  0x96   : > { %v1899_v8 = vpop.f32.mrf.mxu2  ;;  %v1901_v9 = vpop.f32.mrf.mxu3 }
  0x9a   : > { %v426_v42 = vpop.f32.mrf.mxu0  ;;  %v491_v50 = vpop.f32.mrf.mxu1 }
  0x9b   : > { %585 = vmatmul.f32.gmra.mxu2 %v302_v13  ;;  %647 = vmatmul.f32.gmra.mxu3 %v301_v6 }
  0x9e   : > { %v1916_v15 = vpop.f32.mrf.mxu2  ;;  %v1918_v16 = vpop.f32.mrf.mxu3 }
  0xa2   : > { %v429_v49 = vpop.f32.mrf.mxu0  ;;  %v494_v59 = vpop.f32.mrf.mxu1 }
  0xa3   : > { %588 = vmatmul.f32.gmra.mxu2 %v303_v20  ;;  %650 = vmatmul.f32.gmra.mxu3 %v302_v13 }
  0xa6   : > { %v1930_v21 = vpop.f32.mrf.mxu2  ;;  %v1932_v22 = vpop.f32.mrf.mxu3 }
  0xaa   : > { %v432_v58 = vpop.f32.mrf.mxu0  ;;  %v497_v6 = vpop.f32.mrf.mxu1 }
  0xab   : > { %591 = vmatmul.f32.gmra.mxu2 %v304_v26  ;;  %653 = vmatmul.f32.gmra.mxu3 %v303_v20 }
  0xae   : > { %v1947_v28 = vpop.f32.mrf.mxu2  ;;  %v1949_v29 = vpop.f32.mrf.mxu3 }
  0xb2   : > { %v435_v5 = vpop.f32.mrf.mxu0  ;;  %v500_v20 = vpop.f32.mrf.mxu1 }
  0xb3   : > { %594 = vmatmul.f32.gmra.mxu2 %v305_v31  ;;  %656 = vmatmul.f32.gmra.mxu3 %v304_v26 }
  0xb6   : > { %v1970_v37 = vpop.f32.mrf.mxu2  ;;  %v1972_v38 = vpop.f32.mrf.mxu3 }
  0xba   : > { %v438_v19 = vpop.f32.mrf.mxu0  ;;  %v503_v34 = vpop.f32.mrf.mxu1 }
  0xbb   : > { %597 = vmatmul.f32.gmra.mxu2 %v306_v40  ;;  %659 = vmatmul.f32.gmra.mxu3 %v305_v31 }
  0xbe   : > { %v1987_v45 = vpop.f32.mrf.mxu2  ;;  %v1989_v46 = vpop.f32.mrf.mxu3 }
  0xc2   : > { %v441_v33 = vpop.f32.mrf.mxu0 }
  0xc3   : > { %600 = vmatmul.f32.gmra.mxu2 %v307_v47  ;;  %662 = vmatmul.f32.gmra.mxu3 %v306_v40 }
  0xc6   : > { %v1995_v51 = vpop.f32.mrf.mxu2  ;;  %v1997_v52 = vpop.f32.mrf.mxu3 }
  0xca   : > { %v444_v53 = vpop.f32.mrf.mxu0 }
  0xcb   : > { %665 = vmatmul.f32.gmra.mxu3 %v307_v47 }
  0xce   : > { %v2001_v55 = vpop.f32.mrf.mxu3  ;;  %v556_v56 = vpop.f32.mrf.mxu2 }
  0xcf   : > { %v557_v57 = vadd.f32 %v556_v56, %v426_v42  ;;  %v506_v56 = vpop.f32.mrf.mxu1 }
  0xd1   : > { %v675_v60 = vadd.f32 %v1999_v54, %v557_v57 }
  0xd3   : > { %1468 = vtanh.f32 %v675_v60 }
  0xd6   : > { %v559_v62 = vpop.f32.mrf.mxu2  ;;  %v621_v63 = vpop.f32.mrf.mxu3 }
  0xd7   : > { %v560_v0 = vadd.f32 %v559_v62, %v429_v49  ;;  %v622_v1 = vadd.f32 %v621_v63, %v491_v50 }
  0xd9   : > { %v1469_v2 = vpop.eup %1468  ;;  %v677_v3 = vadd.f32 %v1999_v54, %v560_v0  ;;  %v676_v4 = vadd.f32 %v2004_v61, %v622_v1 }
  0xda   : > { %787 = vmatmul.f32.vlgmr.msrb.gmra.mxu0 %v1469_v2 }
  0xdb   : > { %1470 = vtanh.f32 %v677_v3 }
  0xdc   : > { %1472 = vtanh.f32 %v676_v4 }
  0xde   : > { %v562_v7 = vpop.f32.mrf.mxu2  ;;  %v624_v10 = vpop.f32.mrf.mxu3 }
  0xdf   : > { %v563_v11 = vadd.f32 %v562_v7, %v432_v58  ;;  %v625_v12 = vadd.f32 %v624_v10, %v494_v59  ;;  %v509_v7 = vpop.f32.mrf.mxu1 }
  0xe1   : > { %v1471_v13 = vpop.eup %1470  ;;  %v679_v14 = vadd.f32 %v1999_v54, %v563_v11  ;;  %v678_v17 = vadd.f32 %v2004_v61, %v625_v12 }
  0xe2   : > { %v1473_v18 = vpop.eup %1472  ;;  %790 = vmatmul.f32.gmra.mxu0 %v1471_v13 }
  0xe3   : > { %1474 = vtanh.f32 %v679_v14  ;;  %852 = vmatmul.f32.vlgmr.msrb.gmra.mxu1 %v1473_v18 }
  0xe4   : > { %1476 = vtanh.f32 %v678_v17 }
  0xe6   : > { %v565_v23 = vpop.f32.mrf.mxu2  ;;  %v627_v24 = vpop.f32.mrf.mxu3 }
  0xe7   : > { %v566_v25 = vadd.f32 %v565_v23, %v435_v5  ;;  %v628_v26 = vadd.f32 %v627_v24, %v497_v6  ;;  %v447_v6 = vpop.f32.mrf.mxu0  ;;  %v512_v23 = vpop.f32.mrf.mxu1 }
  0xe9   : > { %v1475_v27 = vpop.eup %1474  ;;  %v681_v30 = vadd.f32 %v1999_v54, %v566_v25  ;;  %v680_v31 = vadd.f32 %v2004_v61, %v628_v26 }
  0xea   : > { %v1477_v32 = vpop.eup %1476  ;;  %793 = vmatmul.f32.gmra.mxu0 %v1475_v27 }
  0xeb   : > { %1478 = vtanh.f32 %v681_v30  ;;  %855 = vmatmul.f32.gmra.mxu1 %v1477_v32 }
  0xec   : > { %1480 = vtanh.f32 %v680_v31 }
  0xee   : > { %v568_v35 = vpop.f32.mrf.mxu2  ;;  %v630_v36 = vpop.f32.mrf.mxu3 }
  0xef   : > { %v569_v39 = vadd.f32 %v568_v35, %v438_v19  ;;  %v631_v40 = vadd.f32 %v630_v36, %v500_v20  ;;  %v450_v20 = vpop.f32.mrf.mxu0 }
  0xf1   : > { %v1479_v41 = vpop.eup %1478  ;;  %v683_v42 = vadd.f32 %v1999_v54, %v569_v39  ;;  %v682_v43 = vadd.f32 %v2004_v61, %v631_v40 }
  0xf2   : > { %v1481_v44 = vpop.eup %1480  ;;  %796 = vmatmul.f32.gmra.mxu0 %v1479_v41 }
  0xf3   : > { %1482 = vtanh.f32 %v683_v42  ;;  %858 = vmatmul.f32.gmra.mxu1 %v1481_v44 }
  0xf4   : > { %1484 = vtanh.f32 %v682_v43 }
  0xf6   : > { %v571_v47 = vpop.f32.mrf.mxu2  ;;  %v633_v48 = vpop.f32.mrf.mxu3 }
  0xf7   : > { %v572_v49 = vadd.f32 %v571_v47, %v441_v33  ;;  %v634_v50 = vadd.f32 %v633_v48, %v503_v34 }
  0xf9   : > { %v1483_v57 = vpop.eup %1482  ;;  %v685_v58 = vadd.f32 %v1999_v54, %v572_v49  ;;  %v684_v59 = vadd.f32 %v2004_v61, %v634_v50 }
  0xfa   : > { %v1485_v60 = vpop.eup %1484  ;;  %799 = vmatmul.f32.gmra.mxu0 %v1483_v57 }
  0xfb   : > { %1486 = vtanh.f32 %v685_v58  ;;  %861 = vmatmul.f32.gmra.mxu1 %v1485_v60 }
  0xfc   : > { %1488 = vtanh.f32 %v684_v59 }
  0xfe   : > { %v574_v62 = vpop.f32.mrf.mxu2  ;;  %v636_v63 = vpop.f32.mrf.mxu3 }
  0xff   : > { %v575_v0 = vadd.f32 %v574_v62, %v444_v53  ;;  %v637_v1 = vadd.f32 %v636_v63, %v506_v56 }
 0x101   : > { %v1487_v2 = vpop.eup %1486  ;;  %v687_v3 = vadd.f32 %v1999_v54, %v575_v0  ;;  %v686_v4 = vadd.f32 %v2004_v61, %v637_v1 }
 0x102   : > { %v1489_v5 = vpop.eup %1488  ;;  %802 = vmatmul.f32.gmra.mxu0 %v1487_v2 }
 0x103   : > { %1490 = vtanh.f32 %v687_v3  ;;  %864 = vmatmul.f32.gmra.mxu1 %v1489_v5 }
 0x104   : > { %1492 = vtanh.f32 %v686_v4 }
 0x106   : > { %v577_v10 = vpop.f32.mrf.mxu2  ;;  %v639_v11 = vpop.f32.mrf.mxu3 }
 0x107   : > { %v578_v12 = vadd.f32 %v577_v10, %v447_v6  ;;  %v640_v13 = vadd.f32 %v639_v11, %v509_v7 }
 0x109   : > { %v1491_v14 = vpop.eup %1490  ;;  %v689_v17 = vadd.f32 %v1999_v54, %v578_v12  ;;  %v688_v18 = vadd.f32 %v2004_v61, %v640_v13 }
 0x10a   : > { %v1493_v19 = vpop.eup %1492  ;;  %805 = vmatmul.f32.gmra.mxu0 %v1491_v14 }
 0x10b   : > { %1494 = vtanh.f32 %v689_v17  ;;  %867 = vmatmul.f32.gmra.mxu1 %v1493_v19 }
 0x10c   : > { %1496 = vtanh.f32 %v688_v18 }
 0x10e   : > { %v580_v24 = vpop.f32.mrf.mxu2  ;;  %v642_v25 = vpop.f32.mrf.mxu3 }
 0x10f   : > { %v581_v26 = vadd.f32 %v580_v24, %v450_v20  ;;  %v643_v27 = vadd.f32 %v642_v25, %v512_v23 }
 0x111   : > { %v1495_v30 = vpop.eup %1494  ;;  %v691_v31 = vadd.f32 %v1999_v54, %v581_v26  ;;  %v690_v32 = vadd.f32 %v2004_v61, %v643_v27 }
 0x112   : > { %v1497_v33 = vpop.eup %1496  ;;  %808 = vmatmul.f32.gmra.mxu0 %v1495_v30 }
 0x113   : > { %1498 = vtanh.f32 %v691_v31  ;;  %870 = vmatmul.f32.gmra.mxu1 %v1497_v33 }
 0x114   : > { %1500 = vtanh.f32 %v690_v32 }
 0x116   : > { %v583_v34 = vpop.f32.mrf.mxu2  ;;  %v645_v35 = vpop.f32.mrf.mxu3 }
 0x117   : > { %v584_v36 = vadd.f32 %v583_v34, %v1899_v8  ;;  %v646_v39 = vadd.f32 %v645_v35, %v1901_v9 }
 0x119   : > { %v1499_v40 = vpop.eup %1498  ;;  %v693_v41 = vadd.f32 %v1999_v54, %v584_v36  ;;  %v692_v42 = vadd.f32 %v2004_v61, %v646_v39 }
 0x11a   : > { %v1501_v43 = vpop.eup %1500  ;;  %811 = vmatmul.f32.gmra.mxu0 %v1499_v40 }
 0x11b   : > { %1502 = vtanh.f32 %v693_v41  ;;  %873 = vmatmul.f32.gmra.mxu1 %v1501_v43 }
 0x11c   : > { %1504 = vtanh.f32 %v692_v42 }
 0x11e   : > { %v586_v44 = vpop.f32.mrf.mxu2  ;;  %v648_v47 = vpop.f32.mrf.mxu3 }
 0x11f   : > { %v587_v48 = vadd.f32 %v586_v44, %v1916_v15  ;;  %v649_v49 = vadd.f32 %v648_v47, %v1918_v16 }
 0x121   : > { %v1503_v50 = vpop.eup %1502  ;;  %v695_v8 = vadd.f32 %v1999_v54, %v587_v48  ;;  %v694_v9 = vadd.f32 %v2004_v61, %v649_v49 }
 0x122   : > { %v1505_v53 = vpop.eup %1504  ;;  %814 = vmatmul.f32.gmra.mxu0 %v1503_v50 }
 0x123   : > { %1506 = vtanh.f32 %v695_v8  ;;  %876 = vmatmul.f32.gmra.mxu1 %v1505_v53 }
 0x124   : > { %1508 = vtanh.f32 %v694_v9 }
 0x126   : > { %v589_v56 = vpop.f32.mrf.mxu2  ;;  %v651_v57 = vpop.f32.mrf.mxu3 }
 0x127   : > { %v590_v58 = vadd.f32 %v589_v56, %v1930_v21  ;;  %v652_v59 = vadd.f32 %v651_v57, %v1932_v22 }
 0x129   : > { %v1507_v60 = vpop.eup %1506  ;;  %v697_v15 = vadd.f32 %v1999_v54, %v590_v58  ;;  %v696_v16 = vadd.f32 %v2004_v61, %v652_v59 }
 0x12a   : > { %v1509_v62 = vpop.eup %1508  ;;  %817 = vmatmul.f32.gmra.mxu0 %v1507_v60 }
 0x12b   : > { %1510 = vtanh.f32 %v697_v15  ;;  %879 = vmatmul.f32.gmra.mxu1 %v1509_v62 }
 0x12c   : > { %1512 = vtanh.f32 %v696_v16 }
 0x12e   : > { %v592_v63 = vpop.f32.mrf.mxu2  ;;  %v654_v0 = vpop.f32.mrf.mxu3 }
 0x12f   : > { %v593_v1 = vadd.f32 %v592_v63, %v1947_v28  ;;  %v655_v2 = vadd.f32 %v654_v0, %v1949_v29 }
 0x131   : > { %v1511_v3 = vpop.eup %1510  ;;  %v699_v21 = vadd.f32 %v1999_v54, %v593_v1  ;;  %v698_v22 = vadd.f32 %v2004_v61, %v655_v2 }
 0x132   : > { %v1513_v4 = vpop.eup %1512  ;;  %820 = vmatmul.f32.gmra.mxu0 %v1511_v3 }
 0x133   : > { %1514 = vtanh.f32 %v699_v21  ;;  %882 = vmatmul.f32.gmra.mxu1 %v1513_v4 }
 0x134   : > { %1516 = vtanh.f32 %v698_v22 }
 0x136   : > { %v595_v5 = vpop.f32.mrf.mxu2  ;;  %v657_v6 = vpop.f32.mrf.mxu3 }
 0x137   : > { %v596_v7 = vadd.f32 %v595_v5, %v1970_v37  ;;  %v658_v10 = vadd.f32 %v657_v6, %v1972_v38 }
 0x139   : > { %v1515_v11 = vpop.eup %1514  ;;  %v701_v28 = vadd.f32 %v1999_v54, %v596_v7  ;;  %v700_v29 = vadd.f32 %v2004_v61, %v658_v10 }
 0x13a   : > { %v1517_v12 = vpop.eup %1516  ;;  %823 = vmatmul.f32.gmra.mxu0 %v1515_v11 }
 0x13b   : > { %1518 = vtanh.f32 %v701_v28  ;;  %885 = vmatmul.f32.gmra.mxu1 %v1517_v12 }
 0x13c   : > { %1520 = vtanh.f32 %v700_v29 }
 0x13e   : > { %v598_v13 = vpop.f32.mrf.mxu2  ;;  %v660_v14 = vpop.f32.mrf.mxu3 }
 0x13f   : > { %v599_v17 = vadd.f32 %v598_v13, %v1987_v45  ;;  %v661_v18 = vadd.f32 %v660_v14, %v1989_v46 }
 0x141   : > { %v1519_v19 = vpop.eup %1518  ;;  %v703_v37 = vadd.f32 %v1999_v54, %v599_v17  ;;  %v702_v38 = vadd.f32 %v2004_v61, %v661_v18 }
 0x142   : > { %v1521_v20 = vpop.eup %1520  ;;  %826 = vmatmul.f32.gmra.mxu0 %v1519_v19 }
 0x143   : > { %1522 = vtanh.f32 %v703_v37  ;;  %888 = vmatmul.f32.gmra.mxu1 %v1521_v20 }
 0x144   : > { %1524 = vtanh.f32 %v702_v38 }
 0x146   : > { %v601_v23 = vpop.f32.mrf.mxu2  ;;  %v663_v24 = vpop.f32.mrf.mxu3 }
 0x147   : > { %v602_v25 = vadd.f32 %v601_v23, %v1995_v51  ;;  %v664_v26 = vadd.f32 %v663_v24, %v1997_v52 }
 0x149   : > { %v1523_v27 = vpop.eup %1522  ;;  %v705_v45 = vadd.f32 %v1999_v54, %v602_v25  ;;  %v704_v46 = vadd.f32 %v2004_v61, %v664_v26 }
 0x14a   : > { %v1525_v30 = vpop.eup %1524  ;;  %829 = vmatmul.f32.gmra.mxu0 %v1523_v27 }
 0x14b   : > { %1526 = vtanh.f32 %v705_v45  ;;  %891 = vmatmul.f32.gmra.mxu1 %v1525_v30 }
 0x14c   : > { %1528 = vtanh.f32 %v704_v46 }
 0x14e   : > { %v666_v31 = vpop.f32.mrf.mxu3 }
 0x14f   : > { %v667_v32 = vadd.f32 %v666_v31, %v2001_v55 }
 0x151   : > { %v1527_v33 = vpop.eup %1526  ;;  %v706_v34 = vadd.f32 %v2004_v61, %v667_v32 }
 0x152   : > { %v1529_v35 = vpop.eup %1528  ;;  %832 = vmatmul.f32.vlgmr.msra.gmra.mxu2 %v1527_v33 }
 0x153   : > { %1530 = vtanh.f32 %v706_v34  ;;  %894 = vmatmul.f32.gmra.mxu1 %v1529_v35 }
 0x157   : > { %v788_v51 = vpop.f32.mrf.mxu0 }
 0x159   : > { %v1531_v52 = vpop.eup %1530 }
 0x15b   : > { %897 = vmatmul.f32.gmra.mxu1 %v1531_v52 }
 0x15f   : > { %v791_v54 = vpop.f32.mrf.mxu0 }
 0x160   : > { %v853_v36 = vpop.f32.mrf.mxu1 }
 0x161   : > { %v2052_v39 = vadd.f32 %v853_v36, %v788_v51 }
 0x163   : > { %v902_v40 = vsel %vm901_vm1, %v2052_v39, -inf }
 0x164   : > { %903 = vmax.xlane.f32.xlu0 %v902_v40 }
 0x167   : > { %v794_v55 = vpop.f32.mrf.mxu0 }
 0x168   : > { %v856_v41 = vpop.f32.mrf.mxu1 }
 0x169   : > { %v2056_v42 = vadd.f32 %v856_v41, %v791_v54 }
 0x16b   : > { %v905_v61 = vsel %vm901_vm1, %v2056_v42, -inf }
 0x16c   : > { %906 = vmax.xlane.f32.xlu0 %v905_v61 }
 0x16f   : > { %v797_v43 = vpop.f32.mrf.mxu0 }
 0x170   : > { %v859_v44 = vpop.f32.mrf.mxu1 }
 0x171   : > { %v2060_v47 = vadd.f32 %v859_v44, %v794_v55 }
 0x173   : > { %v908_v48 = vsel %vm901_vm1, %v2060_v47, -inf }
 0x174   : > { %909 = vmax.xlane.f32.xlu1 %v908_v48 }
 0x177   : > { %v800_v49 = vpop.f32.mrf.mxu0 }
 0x178   : > { %v862_v50 = vpop.f32.mrf.mxu1 }
 0x179   : > { %v2064_v8 = vadd.f32 %v862_v50, %v797_v43 }
 0x17b   : > { %v911_v9 = vsel %vm901_vm1, %v2064_v8, -inf }
 0x17c   : > { %912 = vmax.xlane.f32.xlu1 %v911_v9 }
 0x17f   : > { %v803_v53 = vpop.f32.mrf.mxu0 }
 0x180   : > { %v865_v56 = vpop.f32.mrf.mxu1 }
 0x181   : > { %v2068_v57 = vadd.f32 %v865_v56, %v800_v49 }
 0x183   : > { %v914_v58 = vsel %vm901_vm1, %v2068_v57, -inf }
 0x184   : > { %915 = vmax.xlane.f32.xlu2 %v914_v58 }
 0x187   : > { %v806_v59 = vpop.f32.mrf.mxu0 }
 0x188   : > { %v868_v60 = vpop.f32.mrf.mxu1 }
 0x189   : > { %v2072_v15 = vadd.f32 %v868_v60, %v803_v53 }
 0x18b   : > { %v917_v16 = vsel %vm901_vm1, %v2072_v15, -inf }
 0x18c   : > { %918 = vmax.xlane.f32.xlu2 %v917_v16 }
 0x18f   : > { %v809_v62 = vpop.f32.mrf.mxu0 }
 0x190   : > { %v871_v63 = vpop.f32.mrf.mxu1 }
 0x191   : > { %v2076_v0 = vadd.f32 %v871_v63, %v806_v59 }
 0x193   : > { %v920_v1 = vsel %vm901_vm1, %v2076_v0, -inf }
 0x194   : > { %921 = vmax.xlane.f32.xlu0 %v920_v1 }
 0x197   : > { %v812_v2 = vpop.f32.mrf.mxu0 }
 0x198   : > { %v874_v3 = vpop.f32.mrf.mxu1 }
 0x199   : > { %v2080_v21 = vadd.f32 %v874_v3, %v809_v62 }
 0x19b   : > { %v923_v22 = vsel %vm901_vm1, %v2080_v21, -inf }
 0x19c   : > { %924 = vmax.xlane.f32.xlu1 %v923_v22 }
 0x19f   : > { %v815_v4 = vpop.f32.mrf.mxu0 }
 0x1a0   : > { %v877_v5 = vpop.f32.mrf.mxu1 }
 0x1a1   : > { %v2084_v6 = vadd.f32 %v877_v5, %v812_v2 }
 0x1a3   : > { %v926_v7 = vsel %vm901_vm1, %v2084_v6, -inf }
 0x1a4   : > { %927 = vmax.xlane.f32.xlu2 %v926_v7 }
 0x1a7   : > { %v818_v10 = vpop.f32.mrf.mxu0 }
 0x1a8   : > { %v880_v11 = vpop.f32.mrf.mxu1 }
 0x1a9   : > { %v2088_v28 = vadd.f32 %v880_v11, %v815_v4 }
 0x1ab   : > { %v929_v29 = vsel %vm901_vm1, %v2088_v28, -inf }
 0x1ac   : > { %930 = vmax.xlane.f32.xlu0 %v929_v29 }
 0x1af   : > { %v821_v14 = vpop.f32.mrf.mxu0 }
 0x1b0   : > { %v883_v12 = vpop.f32.mrf.mxu1 }
 0x1b1   : > { %v2092_v13 = vadd.f32 %v883_v12, %v818_v10 }
 0x1b3   : > { %v932_v17 = vsel %vm901_vm1, %v2092_v13, -inf }
 0x1b4   : > { %933 = vmax.xlane.f32.xlu1 %v932_v17 }
 0x1b7   : > { %v824_v38 = vpop.f32.mrf.mxu0 }
 0x1b8   : > { %v886_v18 = vpop.f32.mrf.mxu1 }
 0x1b9   : > { %v2096_v19 = vadd.f32 %v886_v18, %v821_v14 }
 0x1bb   : > { %v935_v37 = vsel %vm901_vm1, %v2096_v19, -inf }
 0x1bc   : > { %936 = vmax.xlane.f32.xlu2 %v935_v37 }
 0x1bf   : > { %v827_v25 = vpop.f32.mrf.mxu0 }
 0x1c0   : > { %v889_v20 = vpop.f32.mrf.mxu1 }
 0x1c1   : > { %v2100_v23 = vadd.f32 %v889_v20, %v824_v38 }
 0x1c3   : > { %v938_v24 = vsel %vm901_vm1, %v2100_v23, -inf }
 0x1c4   : > { %939 = vmax.xlane.f32.xlu0 %v938_v24 }
 0x1c7   : > { %v830_v46 = vpop.f32.mrf.mxu0 }
 0x1c8   : > { %v892_v26 = vpop.f32.mrf.mxu1 }
 0x1c9   : > { %v2104_v27 = vadd.f32 %v892_v26, %v827_v25 }
 0x1cb   : > { %v941_v45 = vsel %vm901_vm1, %v2104_v27, -inf }
 0x1cc   : > { %942 = vmax.xlane.f32.xlu1 %v941_v45 }
 0x1d0   : > { %v895_v30 = vpop.f32.mrf.mxu1 }
 0x1d1   : > { %v2108_v31 = vadd.f32 %v895_v30, %v830_v46 }
 0x1d3   : > { %v944_v32 = vsel %vm901_vm1, %v2108_v31, -inf }
 0x1d4   : > { %945 = vmax.xlane.f32.xlu2 %v944_v32 }
 0x1d5   : > { %v833_v34 = vpop.f32.mrf.mxu2 }
 0x1d7   : > { %v904_v33 = vpop.xlane.xlu0 %903 }
 0x1d8   : > { %v950_v35 = vsub.f32 %v2052_v39, %v904_v33  ;;  %v898_v51 = vpop.f32.mrf.mxu1 }
 0x1d9   : > { %v2113_v52 = vadd.f32 %v898_v51, %v833_v34 }
 0x1da   : > { %v966_v54 = vmul.f32 1.442695, %v950_v35 }
 0x1db   : > { %v947_v36 = vsel %vm901_vm1, %v2113_v52, -inf }
 0x1dc   : > { %1532 = vpow2.f32 %v966_v54  ;;  %948 = vmax.xlane.f32.xlu0 %v947_v36 }
 0x1df   : > { %v907_v40 = vpop.xlane.xlu0 %906 }
 0x1e0   : > { %v951_v55 = vsub.f32 %v2056_v42, %v907_v40 }
 0x1e2   : > { %v2118_v41 = vpop.eup %1532  ;;  %v968_v61 = vmul.f32 1.442695, %v951_v55 }
 0x1e3   : > { %v998_v43 = vsel %vm901_vm1, %v2118_v41, 0.0 }
 0x1e4   : > { %1534 = vpow2.f32 %v968_v61  ;;  %999 = vadd.xlane.f32.xlu1 %v998_v43 }
 0x1e7   : > { %v910_v39 = vpop.xlane.xlu1 %909 }
 0x1e8   : > { %v952_v44 = vsub.f32 %v2060_v47, %v910_v39 }
 0x1ea   : > { %v2123_v48 = vpop.eup %1534  ;;  %v970_v49 = vmul.f32 1.442695, %v952_v44 }
 0x1eb   : > { %v1001_v50 = vsel %vm901_vm1, %v2123_v48, 0.0 }
 0x1ec   : > { %1536 = vpow2.f32 %v970_v49  ;;  %1002 = vadd.xlane.f32.xlu2 %v1001_v50 }
 0x1ef   : > { %v913_v42 = vpop.xlane.xlu1 %912 }
 0x1f0   : > { %v953_v9 = vsub.f32 %v2064_v8, %v913_v42 }
 0x1f2   : > { %v2128_v53 = vpop.eup %1536  ;;  %v972_v56 = vmul.f32 1.442695, %v953_v9 }
 0x1f3   : > { %v1004_v58 = vsel %vm901_vm1, %v2128_v53, 0.0 }
 0x1f4   : > { %1538 = vpow2.f32 %v972_v56  ;;  %1005 = vadd.xlane.f32.xlu0 %v1004_v58 }
 0x1f7   : > { %v916_v47 = vpop.xlane.xlu2 %915 }
 0x1f8   : > { %v954_v59 = vsub.f32 %v2068_v57, %v916_v47 }
 0x1fa   : > { %v2133_v60 = vpop.eup %1538  ;;  %v974_v16 = vmul.f32 1.442695, %v954_v59 }
 0x1fb   : > { %v1007_v62 = vsel %vm901_vm1, %v2133_v60, 0.0 }
 0x1fc   : > { %1540 = vpow2.f32 %v974_v16  ;;  %1008 = vadd.xlane.f32.xlu1 %v1007_v62 }
 0x1ff   : > { %v919_v8 = vpop.xlane.xlu2 %918 }
 0x200   : > { %v955_v63 = vsub.f32 %v2072_v15, %v919_v8 }
 0x202   : > { %v2138_v1 = vpop.eup %1540  ;;  %v976_v2 = vmul.f32 1.442695, %v955_v63 }
 0x203   : > { %v1010_v3 = vsel %vm901_vm1, %v2138_v1, 0.0 }
 0x204   : > { %1542 = vpow2.f32 %v976_v2  ;;  %1011 = vadd.xlane.f32.xlu2 %v1010_v3 }
 0x207   : > { %v922_v57 = vpop.xlane.xlu0 %921 }
 0x208   : > { %v956_v22 = vsub.f32 %v2076_v0, %v922_v57 }
 0x20a   : > { %v2143_v4 = vpop.eup %1542  ;;  %v978_v5 = vmul.f32 1.442695, %v956_v22 }
 0x20b   : > { %v1013_v7 = vsel %vm901_vm1, %v2143_v4, 0.0 }
 0x20c   : > { %1544 = vpow2.f32 %v978_v5  ;;  %1014 = vadd.xlane.f32.xlu0 %v1013_v7 }
 0x20f   : > { %v925_v15 = vpop.xlane.xlu1 %924 }
 0x210   : > { %v957_v10 = vsub.f32 %v2080_v21, %v925_v15 }
 0x212   : > { %v2148_v11 = vpop.eup %1544  ;;  %v980_v29 = vmul.f32 1.442695, %v957_v10 }
 0x213   : > { %v1016_v12 = vsel %vm901_vm1, %v2148_v11, 0.0 }
 0x214   : > { %1546 = vpow2.f32 %v980_v29  ;;  %1017 = vadd.xlane.f32.xlu1 %v1016_v12 }
 0x217   : > { %v928_v0 = vpop.xlane.xlu2 %927 }
 0x218   : > { %v958_v14 = vsub.f32 %v2084_v6, %v928_v0 }
 0x21a   : > { %v2153_v17 = vpop.eup %1546  ;;  %v982_v18 = vmul.f32 1.442695, %v958_v14 }
 0x21b   : > { %v1019_v37 = vsel %vm901_vm1, %v2153_v17, 0.0 }
 0x21c   : > { %1548 = vpow2.f32 %v982_v18  ;;  %1020 = vadd.xlane.f32.xlu2 %v1019_v37 }
 0x21f   : > { %v931_v21 = vpop.xlane.xlu0 %930 }
 0x220   : > { %v959_v38 = vsub.f32 %v2088_v28, %v931_v21 }
 0x222   : > { %v2158_v20 = vpop.eup %1548  ;;  %v984_v24 = vmul.f32 1.442695, %v959_v38 }
 0x223   : > { %v1022_v25 = vsel %vm901_vm1, %v2158_v20, 0.0 }
 0x224   : > { %1550 = vpow2.f32 %v984_v24  ;;  %1023 = vadd.xlane.f32.xlu0 %v1022_v25 }
 0x227   : > { %v934_v6 = vpop.xlane.xlu1 %933 }
 0x228   : > { %v960_v26 = vsub.f32 %v2092_v13, %v934_v6 }
 0x22a   : > { %v2163_v45 = vpop.eup %1550  ;;  %v986_v46 = vmul.f32 1.442695, %v960_v26 }
 0x22b   : > { %v1025_v30 = vsel %vm901_vm1, %v2163_v45, 0.0 }
 0x22c   : > { %1552 = vpow2.f32 %v986_v46  ;;  %1026 = vadd.xlane.f32.xlu1 %v1025_v30 }
 0x22f   : > { %v937_v28 = vpop.xlane.xlu2 %936 }
 0x230   : > { %v961_v32 = vsub.f32 %v2096_v19, %v937_v28 }
 0x232   : > { %v2168_v33 = vpop.eup %1552  ;;  %v988_v34 = vmul.f32 1.442695, %v961_v32 }
 0x233   : > { %v1028_v35 = vsel %vm901_vm1, %v2168_v33, 0.0 }
 0x234   : > { %1554 = vpow2.f32 %v988_v34  ;;  %1029 = vadd.xlane.f32.xlu2 %v1028_v35 }
 0x237   : > { %v940_v13 = vpop.xlane.xlu0 %939 }
 0x238   : > { %v962_v51 = vsub.f32 %v2100_v23, %v940_v13 }
 0x23a   : > { %v2173_v54 = vpop.eup %1554  ;;  %v990_v36 = vmul.f32 1.442695, %v962_v51 }
 0x23b   : > { %v1031_v40 = vsel %vm901_vm1, %v2173_v54, 0.0 }
 0x23c   : > { %1556 = vpow2.f32 %v990_v36  ;;  %1032 = vadd.xlane.f32.xlu0 %v1031_v40 }
 0x23f   : > { %v943_v19 = vpop.xlane.xlu1 %942 }
 0x240   : > { %v963_v55 = vsub.f32 %v2104_v27, %v943_v19 }
 0x242   : > { %v2178_v61 = vpop.eup %1556  ;;  %v992_v43 = vmul.f32 1.442695, %v963_v55 }
 0x243   : > { %v1034_v39 = vsel %vm901_vm1, %v2178_v61, 0.0 }
 0x244   : > { %1558 = vpow2.f32 %v992_v43  ;;  %1035 = vadd.xlane.f32.xlu1 %v1034_v39 }
 0x247   : > { %v946_v23 = vpop.xlane.xlu2 %945 }
 0x248   : > { %v964_v44 = vsub.f32 %v2108_v31, %v946_v23 }
 0x24a   : > { %v2183_v49 = vpop.eup %1558  ;;  %v994_v50 = vmul.f32 1.442695, %v964_v44 }
 0x24b   : > { %v1037_v42 = vsel %vm901_vm1, %v2183_v49, 0.0 }
 0x24c   : > { %1560 = vpow2.f32 %v994_v50  ;;  %1038 = vadd.xlane.f32.xlu2 %v1037_v42 }
 0x24f   : > { %v949_v27 = vpop.xlane.xlu0 %948 }
 0x250   : > { %v965_v9 = vsub.f32 %v2113_v52, %v949_v27 }
 0x252   : > { %v2188_v56 = vpop.eup %1560  ;;  %v996_v58 = vmul.f32 1.442695, %v965_v9 }
 0x253   : > { %v1040_v47 = vsel %vm901_vm1, %v2188_v56, 0.0 }
 0x254   : > { %1562 = vpow2.f32 %v996_v58  ;;  %1041 = vadd.xlane.f32.xlu0 %v1040_v47 }
 0x257   : > { %v1000_v31 = vpop.xlane.xlu1 %999 }
 0x258   : > { %1564 = vrcp.f32 %v1000_v31  ;;  %v1057_v2 = vand.u32 2147483648, %v1000_v31  ;;  %v1055_v57 = vand.u32 2147483647, %v1000_v31  ;;  %vm1051_vm3 = vweird.f32 %v1000_v31 }
 0x25a   : > { %v2192_v59 = vpop.eup %1562  ;;  %v1058_v7 = vor.u32 1.1754944e-38, %v1057_v2  ;;  %vm1056_vm5 = vcmp.eq.f32.partialorder %v1055_v57, 8.507059e+37 }
 0x25b   : > { %v1043_v16 = vsel %vm901_vm1, %v2192_v59, 0.0 }
 0x25c   : > { %1044 = vadd.xlane.f32.xlu1 %v1043_v16 }
 0x25e   : > { %v1565_v62 = vpop.eup %1564 }
 0x25f   : > { %v1047_v8 = vmul.f32 %v1565_v62, %v1000_v31  ;;  %v1003_v63 = vpop.xlane.xlu2 %1002  ;;  %vm1052_vm2 = vweird.f32 %v1565_v62 }
 0x260   : > { %1566 = vrcp.f32 %v1003_v63  ;;  %vm1053_vm4 = vmor %vm1051_vm3, %vm1052_vm2  ;;  %v1072_v18 = vand.u32 2147483648, %v1003_v63  ;;  %v1070_v21 = vand.u32 2147483647, %v1003_v63  ;;  %vm1066_vm7 = vweird.f32 %v1003_v63 }
 0x261   : > { %v1048_v52 = vsub.f32 1.0, %v1047_v8 }
 0x262   : > { %v1073_v25 = vor.u32 1.1754944e-38, %v1072_v18  ;;  %vm1071_vm9 = vcmp.eq.f32.partialorder %v1070_v21, 8.507059e+37 }
 0x263   : > { %v1049_v3 = vmul.f32 %v1565_v62, %v1048_v52 }
 0x265   : > { %v1050_v22 = vadd.f32 %v1565_v62, %v1049_v3 }
 0x266   : > { %v1567_v5 = vpop.eup %1566 }
 0x267   : > { %v1054_v15 = vsel %vm1053_vm4, %v1565_v62, %v1050_v22  ;;  %v1062_v10 = vmul.f32 %v1567_v5, %v1003_v63  ;;  %v1006_v29 = vpop.xlane.xlu0 %1005  ;;  %vm1067_vm6 = vweird.f32 %v1567_v5 }
 0x268   : > { %v1059_v12 = vsel %vm1056_vm5, %v1058_v7, %v1054_v15  ;;  %1568 = vrcp.f32 %v1006_v29  ;;  %vm1068_vm8 = vmor %vm1066_vm7, %vm1067_vm6  ;;  %v1087_v32 = vand.u32 2147483648, %v1006_v29  ;;  %v1085_v35 = vand.u32 2147483647, %v1006_v29 }
 0x269   : > { %v1060_v0 = vmul.f32 %v2118_v41, %v1059_v12  ;;  %v1063_v14 = vsub.f32 1.0, %v1062_v10  ;;  %vm1081_vm11 = vweird.f32 %v1006_v29 }
 0x26a   : > { %v1088_v36 = vor.u32 1.1754944e-38, %v1087_v32  ;;  %vm1086_vm13 = vcmp.eq.f32.partialorder %v1085_v35, 8.507059e+37 }
 0x26b   : > { %1286 = vst.msk [vmem:[%s2200_s23] sm:$0xff] %vm901_vm1, %v1060_v0  ;;  %v1064_v37 = vmul.f32 %v1567_v5, %v1063_v14 }
 0x26d   : > { %v1065_v38 = vadd.f32 %v1567_v5, %v1064_v37 }
 0x26e   : > { %v1569_v24 = vpop.eup %1568 }
 0x26f   : > { %v1069_v6 = vsel %vm1068_vm8, %v1567_v5, %v1065_v38  ;;  %v1077_v26 = vmul.f32 %v1569_v24, %v1006_v29  ;;  %v1009_v46 = vpop.xlane.xlu1 %1008  ;;  %vm1082_vm10 = vweird.f32 %v1569_v24 }
 0x270   : > { %v1074_v30 = vsel %vm1071_vm9, %v1073_v25, %v1069_v6  ;;  %1570 = vrcp.f32 %v1009_v46  ;;  %vm1083_vm12 = vmor %vm1081_vm11, %vm1082_vm10  ;;  %v1102_v23 = vand.u32 2147483648, %v1009_v46  ;;  %v1100_v50 = vand.u32 2147483647, %v1009_v46 }
 0x271   : > { %v1075_v41 = vmul.f32 %v2123_v48, %v1074_v30  ;;  %v1078_v28 = vsub.f32 1.0, %v1077_v26  ;;  %vm1096_vm15 = vweird.f32 %v1009_v46 }
 0x272   : > { %v1103_v9 = vor.u32 1.1754944e-38, %v1102_v23  ;;  %vm1101_vm2 = vcmp.eq.f32.partialorder %v1100_v50, 8.507059e+37 }
 0x273   : > { %1287 = vst.msk [vmem:[%s2200_s23 + $0x8] sm:$0xff] %vm901_vm1, %v1075_v41  ;;  %v1079_v34 = vmul.f32 %v1569_v24, %v1078_v28 }
 0x275   : > { %v1080_v13 = vadd.f32 %v1569_v24, %v1079_v34 }
 0x276   : > { %v1571_v51 = vpop.eup %1570 }
 0x277   : > { %v1084_v40 = vsel %vm1083_vm12, %v1569_v24, %v1080_v13  ;;  %v1092_v19 = vmul.f32 %v1571_v51, %v1009_v46  ;;  %v1012_v55 = vpop.xlane.xlu2 %1011  ;;  %vm1097_vm14 = vweird.f32 %v1571_v51 }
 0x278   : > { %v1089_v43 = vsel %vm1086_vm13, %v1088_v36, %v1084_v40  ;;  %1572 = vrcp.f32 %v1012_v55  ;;  %vm1098_vm0 = vmor %vm1096_vm15, %vm1097_vm14  ;;  %v1117_v8 = vand.u32 2147483648, %v1012_v55  ;;  %v1115_v52 = vand.u32 2147483647, %v1012_v55 }
 0x279   : > { %v1090_v48 = vmul.f32 %v2128_v53, %v1089_v43  ;;  %v1093_v39 = vsub.f32 1.0, %v1092_v19  ;;  %vm1111_vm4 = vweird.f32 %v1012_v55 }
 0x27a   : > { %v1118_v57 = vor.u32 1.1754944e-38, %v1117_v8  ;;  %vm1116_vm6 = vcmp.eq.f32.partialorder %v1115_v52, 8.507059e+37 }
 0x27b   : > { %1288 = vst.msk [vmem:[%s2200_s23 + $0x10] sm:$0xff] %vm901_vm1, %v1090_v48  ;;  %v1094_v44 = vmul.f32 %v1571_v51, %v1093_v39 }
 0x27d   : > { %v1095_v42 = vadd.f32 %v1571_v51, %v1094_v44 }
 0x27e   : > { %v1573_v27 = vpop.eup %1572 }
 0x27f   : > { %v1099_v58 = vsel %vm1098_vm0, %v1571_v51, %v1095_v42  ;;  %v1107_v47 = vmul.f32 %v1573_v27, %v1012_v55  ;;  %v1015_v31 = vpop.xlane.xlu0 %1014  ;;  %vm1112_vm3 = vweird.f32 %v1573_v27 }
 0x280   : > { %v1104_v16 = vsel %vm1101_vm2, %v1103_v9, %v1099_v58  ;;  %1574 = vrcp.f32 %v1015_v31  ;;  %vm1113_vm5 = vmor %vm1111_vm4, %vm1112_vm3  ;;  %v1132_v29 = vand.u32 2147483648, %v1015_v31  ;;  %v1130_v0 = vand.u32 2147483647, %v1015_v31 }
 0x281   : > { %v1105_v53 = vmul.f32 %v2133_v60, %v1104_v16  ;;  %v1108_v62 = vsub.f32 1.0, %v1107_v47  ;;  %vm1126_vm8 = vweird.f32 %v1015_v31 }
 0x282   : > { %v1133_v37 = vor.u32 1.1754944e-38, %v1132_v29  ;;  %vm1131_vm10 = vcmp.eq.f32.partialorder %v1130_v0, 8.507059e+37 }
 0x283   : > { %1289 = vst.msk [vmem:[%s2200_s23 + $0x18] sm:$0xff] %vm901_vm1, %v1105_v53  ;;  %v1109_v63 = vmul.f32 %v1573_v27, %v1108_v62 }
 0x285   : > { %v1110_v2 = vadd.f32 %v1573_v27, %v1109_v63 }
 0x286   : > { %v1575_v3 = vpop.eup %1574 }
 0x287   : > { %v1114_v22 = vsel %vm1113_vm5, %v1573_v27, %v1110_v2  ;;  %v1122_v5 = vmul.f32 %v1575_v3, %v1015_v31  ;;  %v1018_v7 = vpop.xlane.xlu1 %1017  ;;  %vm1127_vm7 = vweird.f32 %v1575_v3 }
 0x288   : > { %v1119_v15 = vsel %vm1116_vm6, %v1118_v57, %v1114_v22  ;;  %1576 = vrcp.f32 %v1018_v7  ;;  %vm1128_vm9 = vmor %vm1126_vm8, %vm1127_vm7  ;;  %v1147_v26 = vand.u32 2147483648, %v1018_v7  ;;  %v1145_v30 = vand.u32 2147483647, %v1018_v7 }
 0x289   : > { %v1120_v60 = vmul.f32 %v2138_v1, %v1119_v15  ;;  %v1123_v10 = vsub.f32 1.0, %v1122_v5  ;;  %vm1141_vm12 = vweird.f32 %v1018_v7 }
 0x28a   : > { %v1148_v32 = vor.u32 1.1754944e-38, %v1147_v26  ;;  %vm1146_vm14 = vcmp.eq.f32.partialorder %v1145_v30, 8.507059e+37 }
 0x28b   : > { %1290 = vst.msk [vmem:[%s2200_s23 + $0x20] sm:$0xff] %vm901_vm1, %v1120_v60  ;;  %v1124_v12 = vmul.f32 %v1575_v3, %v1123_v10 }
 0x28d   : > { %v1125_v14 = vadd.f32 %v1575_v3, %v1124_v12 }
 0x28e   : > { %v1577_v18 = vpop.eup %1576 }
 0x28f   : > { %v1129_v21 = vsel %vm1128_vm9, %v1575_v3, %v1125_v14  ;;  %v1137_v38 = vmul.f32 %v1577_v18, %v1018_v7  ;;  %v1021_v24 = vpop.xlane.xlu2 %1020  ;;  %vm1142_vm11 = vweird.f32 %v1577_v18 }
 0x290   : > { %v1134_v25 = vsel %vm1131_vm10, %v1133_v37, %v1129_v21  ;;  %1578 = vrcp.f32 %v1021_v24  ;;  %vm1143_vm13 = vmor %vm1141_vm12, %vm1142_vm11  ;;  %v1162_v40 = vand.u32 2147483648, %v1021_v24  ;;  %v1160_v55 = vand.u32 2147483647, %v1021_v24 }
 0x291   : > { %v1135_v1 = vmul.f32 %v2143_v4, %v1134_v25  ;;  %v1138_v6 = vsub.f32 1.0, %v1137_v38  ;;  %vm1156_vm0 = vweird.f32 %v1021_v24 }
 0x292   : > { %v1163_v39 = vor.u32 1.1754944e-38, %v1162_v40  ;;  %vm1161_vm3 = vcmp.eq.f32.partialorder %v1160_v55, 8.507059e+37 }
 0x293   : > { %1291 = vst.msk [vmem:[%s2200_s23 + $0x28] sm:$0xff] %vm901_vm1, %v1135_v1  ;;  %v1139_v46 = vmul.f32 %v1577_v18, %v1138_v6 }
 0x295   : > { %v1140_v41 = vadd.f32 %v1577_v18, %v1139_v46 }
 0x296   : > { %v1579_v28 = vpop.eup %1578 }
 0x297   : > { %v1144_v34 = vsel %vm1143_vm13, %v1577_v18, %v1140_v41  ;;  %v1152_v35 = vmul.f32 %v1579_v28, %v1021_v24  ;;  %v1024_v13 = vpop.xlane.xlu0 %1023  ;;  %vm1157_vm15 = vweird.f32 %v1579_v28 }
 0x298   : > { %v1149_v51 = vsel %vm1146_vm14, %v1148_v32, %v1144_v34  ;;  %1580 = vrcp.f32 %v1024_v13  ;;  %vm1158_vm2 = vmor %vm1156_vm0, %vm1157_vm15  ;;  %v1177_v9 = vand.u32 2147483648, %v1024_v13  ;;  %v1175_v47 = vand.u32 2147483647, %v1024_v13 }
 0x299   : > { %v1150_v4 = vmul.f32 %v2148_v11, %v1149_v51  ;;  %v1153_v36 = vsub.f32 1.0, %v1152_v35  ;;  %vm1171_vm5 = vweird.f32 %v1024_v13 }
 0x29a   : > { %v1178_v53 = vor.u32 1.1754944e-38, %v1177_v9  ;;  %vm1176_vm7 = vcmp.eq.f32.partialorder %v1175_v47, 8.507059e+37 }
 0x29b   : > { %1292 = vst.msk [vmem:[%s2200_s23 + $0x30] sm:$0xff] %vm901_vm1, %v1150_v4  ;;  %v1154_v19 = vmul.f32 %v1579_v28, %v1153_v36 }
 0x29d   : > { %v1155_v43 = vadd.f32 %v1579_v28, %v1154_v19 }
 0x29e   : > { %v1581_v48 = vpop.eup %1580 }
 0x29f   : > { %v1159_v23 = vsel %vm1158_vm2, %v1579_v28, %v1155_v43  ;;  %v1167_v44 = vmul.f32 %v1581_v48, %v1024_v13  ;;  %v1027_v50 = vpop.xlane.xlu1 %1026  ;;  %vm1172_vm4 = vweird.f32 %v1581_v48 }
 0x2a0   : > { %v1164_v42 = vsel %vm1161_vm3, %v1163_v39, %v1159_v23  ;;  %1582 = vrcp.f32 %v1027_v50  ;;  %vm1173_vm6 = vmor %vm1171_vm5, %vm1172_vm4  ;;  %v1192_v3 = vand.u32 2147483648, %v1027_v50  ;;  %v1190_v22 = vand.u32 2147483647, %v1027_v50 }
 0x2a1   : > { %v1165_v11 = vmul.f32 %v2153_v17, %v1164_v42  ;;  %v1168_v27 = vsub.f32 1.0, %v1167_v44  ;;  %vm1186_vm9 = vweird.f32 %v1027_v50 }
 0x2a2   : > { %v1193_v15 = vor.u32 1.1754944e-38, %v1192_v3  ;;  %vm1191_vm11 = vcmp.eq.f32.partialorder %v1190_v22, 8.507059e+37 }
 0x2a3   : > { %1293 = vst.msk [vmem:[%s2200_s23 + $0x38] sm:$0xff] %vm901_vm1, %v1165_v11  ;;  %v1169_v58 = vmul.f32 %v1581_v48, %v1168_v27 }
 0x2a5   : > { %v1170_v31 = vadd.f32 %v1581_v48, %v1169_v58 }
 0x2a6   : > { %v1583_v16 = vpop.eup %1582 }
 0x2a7   : > { %v1174_v62 = vsel %vm1173_vm6, %v1581_v48, %v1170_v31  ;;  %v1182_v8 = vmul.f32 %v1583_v16, %v1027_v50  ;;  %v1030_v63 = vpop.xlane.xlu2 %1029  ;;  %vm1187_vm8 = vweird.f32 %v1583_v16 }
 0x2a8   : > { %v1179_v52 = vsel %vm1176_vm7, %v1178_v53, %v1174_v62  ;;  %1584 = vrcp.f32 %v1030_v63  ;;  %vm1188_vm10 = vmor %vm1186_vm9, %vm1187_vm8  ;;  %v1207_v14 = vand.u32 2147483648, %v1030_v63  ;;  %v1205_v37 = vand.u32 2147483647, %v1030_v63 }
 0x2a9   : > { %v1180_v17 = vmul.f32 %v2158_v20, %v1179_v52  ;;  %v1183_v2 = vsub.f32 1.0, %v1182_v8  ;;  %vm1201_vm13 = vweird.f32 %v1030_v63 }
 0x2aa   : > { %v1208_v24 = vor.u32 1.1754944e-38, %v1207_v14  ;;  %vm1206_vm15 = vcmp.eq.f32.partialorder %v1205_v37, 8.507059e+37 }
 0x2ab   : > { %1294 = vst.msk [vmem:[%s2200_s23 + $0x40] sm:$0xff] %vm901_vm1, %v1180_v17  ;;  %v1184_v57 = vmul.f32 %v1583_v16, %v1183_v2 }
 0x2ad   : > { %v1185_v5 = vadd.f32 %v1583_v16, %v1184_v57 }
 0x2ae   : > { %v1585_v7 = vpop.eup %1584 }
 0x2af   : > { %v1189_v60 = vsel %vm1188_vm10, %v1583_v16, %v1185_v5  ;;  %v1197_v10 = vmul.f32 %v1585_v7, %v1030_v63  ;;  %v1033_v29 = vpop.xlane.xlu0 %1032  ;;  %vm1202_vm12 = vweird.f32 %v1585_v7 }
 0x2b0   : > { %v1194_v12 = vsel %vm1191_vm11, %v1193_v15, %v1189_v60  ;;  %1586 = vrcp.f32 %v1033_v29  ;;  %vm1203_vm14 = vmor %vm1201_vm13, %vm1202_vm12  ;;  %v1222_v30 = vand.u32 2147483648, %v1033_v29  ;;  %v1220_v28 = vand.u32 2147483647, %v1033_v29 }
 0x2b1   : > { %v1195_v20 = vmul.f32 %v2163_v45, %v1194_v12  ;;  %v1198_v0 = vsub.f32 1.0, %v1197_v10  ;;  %vm1216_vm2 = vweird.f32 %v1033_v29 }
 0x2b2   : > { %v1223_v35 = vor.u32 1.1754944e-38, %v1222_v30  ;;  %vm1221_vm4 = vcmp.eq.f32.partialorder %v1220_v28, 8.507059e+37 }
 0x2b3   : > { %1295 = vst.msk [vmem:[%s2200_s23 + $0x48] sm:$0xff] %vm901_vm1, %v1195_v20  ;;  %v1199_v18 = vmul.f32 %v1585_v7, %v1198_v0 }
 0x2b5   : > { %v1200_v21 = vadd.f32 %v1585_v7, %v1199_v18 }
 0x2b6   : > { %v1587_v38 = vpop.eup %1586 }
 0x2b7   : > { %v1204_v25 = vsel %vm1203_vm14, %v1585_v7, %v1200_v21  ;;  %v1212_v1 = vmul.f32 %v1587_v38, %v1033_v29  ;;  %v1036_v6 = vpop.xlane.xlu1 %1035  ;;  %vm1217_vm0 = vweird.f32 %v1587_v38 }
 0x2b8   : > { %v1209_v26 = vsel %vm1206_vm15, %v1208_v24, %v1204_v25  ;;  %1588 = vrcp.f32 %v1036_v6  ;;  %vm1218_vm3 = vmor %vm1216_vm2, %vm1217_vm0  ;;  %v1237_v19 = vand.u32 2147483648, %v1036_v6  ;;  %v1235_v43 = vand.u32 2147483647, %v1036_v6 }
 0x2b9   : > { %v1210_v45 = vmul.f32 %v2168_v33, %v1209_v26  ;;  %v1213_v46 = vsub.f32 1.0, %v1212_v1  ;;  %vm1231_vm6 = vweird.f32 %v1036_v6 }
 0x2ba   : > { %v1238_v23 = vor.u32 1.1754944e-38, %v1237_v19  ;;  %vm1236_vm8 = vcmp.eq.f32.partialorder %v1235_v43, 8.507059e+37 }
 0x2bb   : > { %1296 = vst.msk [vmem:[%s2200_s23 + $0x50] sm:$0xff] %vm901_vm1, %v1210_v45  ;;  %v1214_v41 = vmul.f32 %v1587_v38, %v1213_v46 }
 0x2bd   : > { %v1215_v32 = vadd.f32 %v1587_v38, %v1214_v41 }
 0x2be   : > { %v1589_v34 = vpop.eup %1588 }
 0x2bf   : > { %v1219_v13 = vsel %vm1218_vm3, %v1587_v38, %v1215_v32  ;;  %v1227_v51 = vmul.f32 %v1589_v34, %v1036_v6  ;;  %v1039_v4 = vpop.xlane.xlu2 %1038  ;;  %vm1232_vm5 = vweird.f32 %v1589_v34 }
 0x2c0   : > { %v1224_v36 = vsel %vm1221_vm4, %v1223_v35, %v1219_v13  ;;  %1590 = vrcp.f32 %v1039_v4  ;;  %vm1233_vm7 = vmor %vm1231_vm6, %vm1232_vm5  ;;  %v1252_v9 = vand.u32 2147483648, %v1039_v4  ;;  %v1250_v47 = vand.u32 2147483647, %v1039_v4 }
 0x2c1   : > { %v1225_v33 = vmul.f32 %v2173_v54, %v1224_v36  ;;  %v1228_v40 = vsub.f32 1.0, %v1227_v51  ;;  %vm1246_vm10 = vweird.f32 %v1039_v4 }
 0x2c2   : > { %v1253_v53 = vor.u32 1.1754944e-38, %v1252_v9  ;;  %vm1251_vm12 = vcmp.eq.f32.partialorder %v1250_v47, 8.507059e+37 }
 0x2c3   : > { %1297 = vst.msk [vmem:[%s2200_s23 + $0x58] sm:$0xff] %vm901_vm1, %v1225_v33  ;;  %v1229_v55 = vmul.f32 %v1589_v34, %v1228_v40 }
 0x2c5   : > { %v1230_v48 = vadd.f32 %v1589_v34, %v1229_v55 }
 0x2c6   : > { %v1591_v39 = vpop.eup %1590 }
 0x2c7   : > { %v1234_v44 = vsel %vm1233_vm7, %v1589_v34, %v1230_v48  ;;  %v1242_v50 = vmul.f32 %v1591_v39, %v1039_v4  ;;  %v1042_v42 = vpop.xlane.xlu0 %1041  ;;  %vm1247_vm9 = vweird.f32 %v1591_v39 }
 0x2c8   : > { %v1239_v11 = vsel %vm1236_vm8, %v1238_v23, %v1234_v44  ;;  %1592 = vrcp.f32 %v1042_v42  ;;  %vm1248_vm11 = vmor %vm1246_vm10, %vm1247_vm9  ;;  %v1267_v2 = vand.u32 2147483648, %v1042_v42  ;;  %v1265_v57 = vand.u32 2147483647, %v1042_v42 }
 0x2c9   : > { %v1240_v54 = vmul.f32 %v2178_v61, %v1239_v11  ;;  %v1243_v27 = vsub.f32 1.0, %v1242_v50  ;;  %vm1261_vm14 = vweird.f32 %v1042_v42 }
 0x2ca   : > { %v1268_v7 = vor.u32 1.1754944e-38, %v1267_v2  ;;  %vm1266_vm0 = vcmp.eq.f32.partialorder %v1265_v57, 8.507059e+37 }
 0x2cb   : > { %1298 = vst.msk [vmem:[%s2200_s23 + $0x60] sm:$0xff] %vm901_vm1, %v1240_v54  ;;  %v1244_v58 = vmul.f32 %v1591_v39, %v1243_v27 }
 0x2cd   : > { %v1245_v31 = vadd.f32 %v1591_v39, %v1244_v58 }
 0x2ce   : > { %v1593_v16 = vpop.eup %1592 }
 0x2cf   : > { %v1249_v62 = vsel %vm1248_vm11, %v1591_v39, %v1245_v31  ;;  %v1257_v8 = vmul.f32 %v1593_v16, %v1042_v42  ;;  %v1045_v63 = vpop.xlane.xlu1 %1044  ;;  %vm1262_vm13 = vweird.f32 %v1593_v16 }
 0x2d0   : > { %v1254_v52 = vsel %vm1251_vm12, %v1253_v53, %v1249_v62  ;;  %1594 = vrcp.f32 %v1045_v63  ;;  %vm1263_vm15 = vmor %vm1261_vm14, %vm1262_vm13  ;;  %v1282_v12 = vand.u32 2147483648, %v1045_v63  ;;  %v1280_v0 = vand.u32 2147483647, %v1045_v63 }
 0x2d1   : > { %v1255_v61 = vmul.f32 %v2183_v49, %v1254_v52  ;;  %v1258_v17 = vsub.f32 1.0, %v1257_v8  ;;  %vm1276_vm3 = vweird.f32 %v1045_v63 }
 0x2d2   : > { %v1283_v18 = vor.u32 1.1754944e-38, %v1282_v12  ;;  %vm1281_vm5 = vcmp.eq.f32.partialorder %v1280_v0, 8.507059e+37 }
 0x2d3   : > { %1299 = vst.msk [vmem:[%s2200_s23 + $0x68] sm:$0xff] %vm901_vm1, %v1255_v61  ;;  %v1259_v3 = vmul.f32 %v1593_v16, %v1258_v17 }
 0x2d5   : > { %v1260_v22 = vadd.f32 %v1593_v16, %v1259_v3 }
 0x2d6   : > { %v1595_v5 = vpop.eup %1594 }
 0x2d7   : > { %v1264_v15 = vsel %vm1263_vm15, %v1593_v16, %v1260_v22  ;;  %v1272_v60 = vmul.f32 %v1595_v5, %v1045_v63  ;;  %vm1277_vm2 = vweird.f32 %v1595_v5 }
 0x2d8   : > { %v1269_v10 = vsel %vm1266_vm0, %v1268_v7, %v1264_v15  ;;  %vm1278_vm4 = vmor %vm1276_vm3, %vm1277_vm2 }
 0x2d9   : > { %v1270_v49 = vmul.f32 %v2188_v56, %v1269_v10  ;;  %v1273_v29 = vsub.f32 1.0, %v1272_v60 }
 0x2db   : > { %1300 = vst.msk [vmem:[%s2200_s23 + $0x70] sm:$0xff] %vm901_vm1, %v1270_v49  ;;  %v1274_v20 = vmul.f32 %v1595_v5, %v1273_v29 }
 0x2dd   : > { %v1275_v14 = vadd.f32 %v1595_v5, %v1274_v20 }
 0x2df   : > { %v1279_v37 = vsel %vm1278_vm4, %v1595_v5, %v1275_v14 }
 0x2e0   : > { %v1284_v21 = vsel %vm1281_vm5, %v1283_v18, %v1279_v37 }
 0x2e1   : > { %v1285_v38 = vmul.f32 %v2192_v59, %v1284_v21 }
 0x2e3   : > { %1301 = vst.msk [vmem:[%s2200_s23 + $0x78] sm:$0xff] %vm901_vm1, %v1285_v38 }
 0x2e4 PF: > { %s17_s21 = sadd.s32 1, %s1636_s21  }
 0x2e5   : > { %p14_p7 = scmp.ge.s32.totalorder %s17_s21, 4  }
 0x2e7   :  { %16 = sbr.rel (!%p14_p7) target bundleno = 1 (0x1), region = 82 }
 0x2ec   :  { %1324 = vsyncpa [#allocation3], 1 }
 0x2ed   :  { %1326 = vsyncpa [#allocation3 + $0x1], 1 }

</bundles_post_ra>
